<compile_context>
chip_gen: v7x
topology: tpu7x:2x2x1
jax: 0.10.0
libtpu: 0.0.40
codegen_flags: <defaults>
</compile_context>

<pallas_src>
import numpy as np
import jax
import jax.numpy as jnp
from jax.experimental import pallas as pl
from jax.experimental.pallas import tpu as pltpu

_SUBLANE = 8
_LANE = 128
_MAX_TILE_B = 256   # max batch rows per MXU matmul (fits easily in VMEM on v5e..v7x)


def _round_up(x, m):
    return (x + m - 1) // m * m


def _choose_tile_b(batch):
    """Pick (tile_b, b_pad): large tiles for MXU row occupancy, but keep >=2 grid
    iterations on the batch axis (two v7x TensorCores) whenever batch >= 16."""
    b8 = _round_up(batch, _SUBLANE)
    if b8 < 2 * _SUBLANE:
        return b8, b8
    tile = min(_MAX_TILE_B, _round_up(b8 // 2, _SUBLANE))
    b_pad = _round_up(b8, tile)
    return tile, b_pad


def _elu(x):
    # ELU(alpha=1): x if x > 0 else exp(x) - 1  (clamped exp for stability)
    return jnp.where(x > 0, x, jnp.exp(jnp.minimum(x, 0.0)) - 1.0)


def _pad_rows(x, b_pad):
    x = jnp.asarray(x, jnp.float32)
    pad = b_pad - x.shape[0]
    return x if pad == 0 else jnp.pad(x, ((0, pad), (0, 0)))


def _pad_mid(x, b_pad):
    x = jnp.asarray(x, jnp.float32)
    pad = b_pad - x.shape[1]
    return x if pad == 0 else jnp.pad(x, ((0, 0), (0, pad), (0, 0)))


def _make_selection_mats(e_dim, z_dim, out_pad, h_pad):
    """0/1 matrices turning the flat generated params into the RNN step via MXU.

    pre[:, i] = sum_j Wz[i,j] e[j] + sum_k Wh[i,k] h[k] + bias[i]
    expressed as (params_seg * v_seg) @ sel_seg with v_e = e @ te, v_h = h @ th,
    and h0 extracted from params via xh.
    """
    wz, wh = e_dim * z_dim, z_dim * z_dim
    curr = wz + wh

    sel = np.zeros((out_pad, h_pad), np.float32)
    m = np.arange(wz)
    sel[m, m // e_dim] = 1.0                       # Wz rows -> output column i
    m = np.arange(wh)
    sel[wz + m, m // z_dim] = 1.0                  # Wh rows -> output column i
    i = np.arange(z_dim)
    sel[curr + i, i] = 1.0                         # bias pass-through

    te = np.zeros((e_dim, wz), np.float32)
    m = np.arange(wz)
    te[m % e_dim, m] = 1.0                         # tiles e z_dim times

    th = np.zeros((h_pad, wh), np.float32)
    m = np.arange(wh)
    th[m % z_dim, m] = 1.0                         # tiles h z_dim times

    xh = np.zeros((out_pad, h_pad), np.float32)
    i = np.arange(z_dim)
    xh[curr + z_dim + i, i] = 1.0                  # extracts h0 from flat params

    return (jnp.asarray(sel), jnp.asarray(te), jnp.asarray(th), jnp.asarray(xh))


# ---------------------------------------------------------------------------
# Shared in-kernel RNN pre-activation: three MXU matmuls, no concat / ones.
# ---------------------------------------------------------------------------
def _rnn_pre(params, e, h_prev, te_ref, th_ref, sel_ref):
    wz = te_ref.shape[1]
    wh = th_ref.shape[1]
    v_e = jnp.dot(e, te_ref[...], preferred_element_type=jnp.float32)        # (B, wz)
    v_h = jnp.dot(h_prev, th_ref[...], preferred_element_type=jnp.float32)   # (B, wh)
    pre = jnp.dot(params[:, :wz] * v_e, sel_ref[:wz, :],
                  preferred_element_type=jnp.float32)
    pre = pre + jnp.dot(params[:, wz:wz + wh] * v_h, sel_ref[wz:wz + wh, :],
                        preferred_element_type=jnp.float32)
    pre = pre + jnp.dot(params[:, wz + wh:], sel_ref[wz + wh:, :],
                        preferred_element_type=jnp.float32)
    return pre


# ---------------------------------------------------------------------------
# Kernel 1 (primary): hypernet MLP + full T-step rollout in one pallas_call.
# grid = (batch_tiles, T); gen + h live in VMEM scratch across the T axis.
# ---------------------------------------------------------------------------
def _rollout_kernel(z_ref, e_ref, w1_ref, b1_ref, w2_ref, b2_ref,
                    te_ref, th_ref, xh_ref, sel_ref,
                    hs_ref, gen_scr, h_scr):
    @pl.when(pl.program_id(1) == 0)
    def _():
        z = z_ref[...]
        h_mlp = _elu(jnp.dot(z, w1_ref[...], preferred_element_type=jnp.float32)
                     + b1_ref[...])
        params = (jnp.dot(h_mlp, w2_ref[...], preferred_element_type=jnp.float32)
                  + b2_ref[...])
        gen_scr[...] = params                                 # stays in VMEM for all T
        h_scr[...] = jnp.dot(params, xh_ref[...],
                             preferred_element_type=jnp.float32)   # h0, lane-dense

    params = gen_scr[...]
    pre = _rnn_pre(params, e_ref[0], h_scr[...], te_ref, th_ref, sel_ref)
    h_new = _elu(pre)
    h_scr[...] = h_new
    hs_ref[0] = h_new                                         # (tile_b, h_pad) store


# ---------------------------------------------------------------------------
# Kernel 2 (API parity): hypernet MLP + first RNN step (step-wise usage).
# ---------------------------------------------------------------------------
def _first_step_kernel(z_ref, e_ref, w1_ref, b1_ref, w2_ref, b2_ref,
                       te_ref, th_ref, xh_ref, sel_ref, h_ref, gen_ref):
    z = z_ref[...]
    h_mlp = _elu(jnp.dot(z, w1_ref[...], preferred_element_type=jnp.float32)
                 + b1_ref[...])
    params = (jnp.dot(h_mlp, w2_ref[...], preferred_element_type=jnp.float32)
              + b2_ref[...])
    gen_ref[...] = params
    h0 = jnp.dot(params, xh_ref[...], preferred_element_type=jnp.float32)
    h_ref[...] = _elu(_rnn_pre(params, e_ref[...], h0, te_ref, th_ref, sel_ref))


# ---------------------------------------------------------------------------
# Kernel 3 (API parity): subsequent RNN step with flat generated weights.
# ---------------------------------------------------------------------------
def _step_kernel(e_ref, gen_ref, h_in_ref, te_ref, th_ref, sel_ref, h_out_ref):
    pre = _rnn_pre(gen_ref[...], e_ref[...], h_in_ref[...], te_ref, th_ref, sel_ref)
    h_out_ref[...] = _elu(pre)


# ---------------------------------------------------------------------------
# pallas_call wrappers
# ---------------------------------------------------------------------------
def _bspec1(tile_b, d):
    return pl.BlockSpec((tile_b, d), lambda b: (b, 0))


def _cspec1(shape):
    return pl.BlockSpec(tuple(shape), lambda b: (0, 0))


def _bspec2(tile_b, d):
    return pl.BlockSpec((tile_b, d), lambda b, t: (b, 0))


def _cspec2(shape):
    return pl.BlockSpec(tuple(shape), lambda b, t: (0, 0))


def hyper_rnn_rollout(z, es, w1, b1, w2, b2, te, th, xh, sel, *, tile_b):
    b_pad, in_dim = z.shape
    T, _, e_dim = es.shape
    hidden = w1.shape[1]
    out_pad = w2.shape[1]
    h_pad = sel.shape[1]
    wz, wh = te.shape[1], th.shape[1]
    flops = (2 * b_pad * (in_dim * hidden + hidden * out_pad + out_pad * h_pad)
             + 2 * b_pad * T * (e_dim * wz + h_pad * wh + out_pad * h_pad))
    bytes_accessed = 4 * (z.size + es.size + w1.size + b1.size + w2.size + b2.size
                          + te.size + th.size + xh.size + sel.size
                          + T * b_pad * h_pad)
    return pl.pallas_call(
        _rollout_kernel,
        out_shape=jax.ShapeDtypeStruct((T, b_pad, h_pad), jnp.float32),
        grid=(b_pad // tile_b, T),
        in_specs=[_bspec2(tile_b, in_dim),
                  pl.BlockSpec((1, tile_b, e_dim), lambda b, t: (t, b, 0)),
                  _cspec2(w1.shape), _cspec2(b1.shape),
                  _cspec2(w2.shape), _cspec2(b2.shape),
                  _cspec2(te.shape), _cspec2(th.shape),
                  _cspec2(xh.shape), _cspec2(sel.shape)],
        out_specs=pl.BlockSpec((1, tile_b, h_pad), lambda b, t: (t, b, 0)),
        scratch_shapes=[pltpu.VMEM((tile_b, out_pad), jnp.float32),   # gen
                        pltpu.VMEM((tile_b, h_pad), jnp.float32)],    # carried h
        compiler_params=pltpu.CompilerParams(
            dimension_semantics=("parallel", "arbitrary")),
        cost_estimate=pl.CostEstimate(
            flops=int(flops),
            transcendentals=int(b_pad * (hidden + T * h_pad)),
            bytes_accessed=int(bytes_accessed)),
    )(z, es, w1, b1, w2, b2, te, th, xh, sel)


def hyper_rnn_first_step(z, e, w1, b1, w2, b2, te, th, xh, sel, *, tile_b):
    b_pad, in_dim = z.shape
    e_dim = e.shape[1]
    out_pad = w2.shape[1]
    h_pad = sel.shape[1]
    return pl.pallas_call(
        _first_step_kernel,
        out_shape=(jax.ShapeDtypeStruct((b_pad, h_pad), jnp.float32),
                   jax.ShapeDtypeStruct((b_pad, out_pad), jnp.float32)),
        grid=(b_pad // tile_b,),
        in_specs=[_bspec1(tile_b, in_dim), _bspec1(tile_b, e_dim),
                  _cspec1(w1.shape), _cspec1(b1.shape),
                  _cspec1(w2.shape), _cspec1(b2.shape),
                  _cspec1(te.shape), _cspec1(th.shape),
                  _cspec1(xh.shape), _cspec1(sel.shape)],
        out_specs=(_bspec1(tile_b, h_pad), _bspec1(tile_b, out_pad)),
        compiler_params=pltpu.CompilerParams(dimension_semantics=("parallel",)),
    )(z, e, w1, b1, w2, b2, te, th, xh, sel)


def hyper_rnn_step(e, gen, h, te, th, sel, *, tile_b):
    b_pad, e_dim = e.shape
    out_pad = gen.shape[1]
    h_pad = sel.shape[1]
    return pl.pallas_call(
        _step_kernel,
        out_shape=jax.ShapeDtypeStruct((b_pad, h_pad), jnp.float32),
        grid=(b_pad // tile_b,),
        in_specs=[_bspec1(tile_b, e_dim), _bspec1(tile_b, out_pad),
                  _bspec1(tile_b, h_pad),
                  _cspec1(te.shape), _cspec1(th.shape), _cspec1(sel.shape)],
        out_specs=_bspec1(tile_b, h_pad),
        compiler_params=pltpu.CompilerParams(dimension_semantics=("parallel",)),
    )(e, gen, h, te, th, sel)


# ---------------------------------------------------------------------------
# Module-equivalent wrapper
# ---------------------------------------------------------------------------
class HyperRNN:
    """Pallas port of the PyTorch HyperRNN (HyperHead hypernet + hyper-RNN cell).

    rollout(z, es) is the fused fast path (one pallas_call for the hypernet and all
    T steps).  init_net(z) / forward(e) mirror the PyTorch step-wise API.
    """

    def __init__(self, e_dim, z_dim, in_dim, hidden_dim, key, use_bias=True):
        self.e_dim = e_dim
        self.z_dim = z_dim
        self.in_dim = in_dim
        self.hidden_dim = hidden_dim
        self.wz_shape = e_dim * z_dim
        self.wh_shape = z_dim * z_dim
        self.out_dim = self.wz_shape + self.wh_shape + 2 * z_dim
        self.out_pad = _round_up(self.out_dim, _LANE)        # e.g. 416 -> 512
        self.h_pad = _round_up(z_dim, _LANE)                 # lane-dense hidden state

        k1, k2, k3, k4 = jax.random.split(key, 4)
        s1 = 1.0 / float(np.sqrt(in_dim))
        s2 = 1.0 / float(np.sqrt(hidden_dim))
        # Linear 1 (in_dim -> hidden_dim), stored transposed for x @ W.
        self.w1 = jax.random.uniform(k1, (in_dim, hidden_dim), jnp.float32, -s1, s1)
        self.b1 = (jax.random.uniform(k2, (1, hidden_dim), jnp.float32, -s1, s1)
                   if use_bias else jnp.zeros((1, hidden_dim), jnp.float32))
        # Linear 2 (hidden_dim -> out_dim), zero-padded to out_pad lanes.
        w2 = jax.random.uniform(k3, (hidden_dim, self.out_dim), jnp.float32, -s2, s2)
        b2 = jax.random.uniform(k4, (1, self.out_dim), jnp.float32, -s2, s2)
        self.w2 = jnp.zeros((hidden_dim, self.out_pad),
                            jnp.float32).at[:, :self.out_dim].set(w2)
        self.b2 = jnp.zeros((1, self.out_pad),
                            jnp.float32).at[:, :self.out_dim].set(b2)

        self.sel, self.te, self.th, self.xh = _make_selection_mats(
            e_dim, z_dim, self.out_pad, self.h_pad)

        # step-wise state
        self._z_pad = None
        self._gen = None
        self._h = None
        self._batch = None
        self._tile_b = None

    # -- fused fast path ----------------------------------------------------
    def rollout(self, z, es):
        """z: (B, in_dim); es: (T, B, e_dim) -> (T, B, z_dim) hidden states."""
        B = z.shape[0]
        tile_b, b_pad = _choose_tile_b(B)
        hs = hyper_rnn_rollout(_pad_rows(z, b_pad), _pad_mid(es, b_pad),
                               self.w1, self.b1, self.w2, self.b2,
                               self.te, self.th, self.xh, self.sel, tile_b=tile_b)
        return hs[:, :B, :self.z_dim]

    # -- PyTorch-style step-wise API -----------------------------------------
    def init_net(self, z):
        self._batch = z.shape[0]
        self._tile_b, b_pad = _choose_tile_b(self._batch)
        self._z_pad = _pad_rows(z, b_pad)
        self._gen = None
        self._h = None

    def forward(self, e):
        b_pad = self._z_pad.shape[0]
        e_pad = _pad_rows(e, b_pad)
        if self._gen is None:
            h, self._gen = hyper_rnn_first_step(
                self._z_pad, e_pad, self.w1, self.b1, self.w2, self.b2,
                self.te, self.th, self.xh, self.sel, tile_b=self._tile_b)
        else:
            h = hyper_rnn_step(e_pad, self._gen, self._h, self.te, self.th,
                               self.sel, tile_b=self._tile_b)
        self._h = h
        return h[:self._batch, :self.z_dim]


# ---------------------------------------------------------------------------
# Pure-JAX reference (for correctness check)
# ---------------------------------------------------------------------------
def _ref_rollout(z, es, w1, b1, w2, b2, e_dim, z_dim):
    h_mlp = _elu(z @ w1 + b1)
    params = h_mlp @ w2 + b2
    B = params.shape[0]
    wz, wh = e_dim * z_dim, z_dim * z_dim
    Wz = params[:, :wz].reshape(B, z_dim, e_dim)
    Wh = params[:, wz:wz + wh].reshape(B, z_dim, z_dim)
    bias = params[:, wz + wh:wz + wh + z_dim]
    h = params[:, wz + wh + z_dim:]
    outs = []
    for t in range(es.shape[0]):
        zc = jnp.einsum('bij,bj->bi', Wz, es[t])
        hc = jnp.einsum('bik,bk->bi', Wh, h)
        h = _elu(zc + hc + bias)
        outs.append(h)
    return outs


if __name__ == "__main__":
    B, e_dim, z_dim, in_dim, hidden_dim, T = 2, 8, 16, 4, 32, 3

    key = jax.random.PRNGKey(0)
    k_mod, k_z, k_e = jax.random.split(key, 3)

    model = HyperRNN(e_dim, z_dim, in_dim, hidden_dim, k_mod, use_bias=True)

    z = jax.random.normal(k_z, (B, in_dim), jnp.float32)       # hypernet conditioning
    es = jax.random.normal(k_e, (T, B, e_dim), jnp.float32)    # T RNN step inputs

    # Fused rollout: hypernet + all T steps in one pallas_call.
    hs = jax.block_until_ready(model.rollout(z, es))

    # Step-wise path (PyTorch-style init_net / forward), checked for consistency.
    model.init_net(z)
    h_steps = jnp.stack([model.forward(es[t]) for t in range(T)])
    h_steps = jax.block_until_ready(h_steps)

    refs = jnp.stack(_ref_rollout(z, es, model.w1, model.b1,
                                  model.w2[:, :model.out_dim],
                                  model.b2[:, :model.out_dim], e_dim, z_dim))

    assert hs.shape == (T, B, z_dim) and h_steps.shape == (T, B, z_dim)
    assert jnp.allclose(hs, refs, atol=1e-3, rtol=1e-3), "fused rollout mismatch"
    assert jnp.allclose(h_steps, refs, atol=1e-3, rtol=1e-3), "step-wise mismatch"

    print("KERNEL_OK")
</pallas_src>

<mosaic_0001>
module attributes {stable_mosaic.version = 11 : i64} {
  func.func @_rollout_kernel(%arg0: i32, %arg1: i32, %arg2: memref<8x4xf32, #tpu.memory_space<vmem>>, %arg3: memref<1x8x8xf32, #tpu.memory_space<vmem>>, %arg4: memref<4x32xf32, #tpu.memory_space<vmem>>, %arg5: memref<1x32xf32, #tpu.memory_space<vmem>>, %arg6: memref<32x512xf32, #tpu.memory_space<vmem>>, %arg7: memref<1x512xf32, #tpu.memory_space<vmem>>, %arg8: memref<8x128xf32, #tpu.memory_space<vmem>>, %arg9: memref<128x256xf32, #tpu.memory_space<vmem>>, %arg10: memref<512x128xf32, #tpu.memory_space<vmem>>, %arg11: memref<512x128xf32, #tpu.memory_space<vmem>>, %arg12: memref<1x8x128xf32, #tpu.memory_space<vmem>>, %arg13: memref<8x512xf32, #tpu.memory_space<vmem>>, %arg14: memref<8x128xf32, #tpu.memory_space<vmem>>) attributes {dimension_semantics = [#tpu.dimension_semantics<parallel>, #tpu.dimension_semantics<arbitrary>], iteration_bounds = array<i64: 1, 3>, scalar_prefetch = 0 : i64, scratch_operands = 2 : i64, tpu.core_type = #tpu.core_type<tc>, window_params = [{transform_indices = @transform_0, window_bounds = array<i64: 8, 4>}, {transform_indices = @transform_1, window_bounds = array<i64: 1, 8, 8>}, {pipeline_mode = #tpu.pipeline_mode<synchronous>, transform_indices = @transform_2, window_bounds = array<i64: 4, 32>}, {pipeline_mode = #tpu.pipeline_mode<synchronous>, transform_indices = @transform_3, window_bounds = array<i64: 1, 32>}, {pipeline_mode = #tpu.pipeline_mode<synchronous>, transform_indices = @transform_4, window_bounds = array<i64: 32, 512>}, {pipeline_mode = #tpu.pipeline_mode<synchronous>, transform_indices = @transform_5, window_bounds = array<i64: 1, 512>}, {pipeline_mode = #tpu.pipeline_mode<synchronous>, transform_indices = @transform_6, window_bounds = array<i64: 8, 128>}, {pipeline_mode = #tpu.pipeline_mode<synchronous>, transform_indices = @transform_7, window_bounds = array<i64: 128, 256>}, {pipeline_mode = #tpu.pipeline_mode<synchronous>, transform_indices = @transform_8, window_bounds = array<i64: 512, 128>}, {pipeline_mode = #tpu.pipeline_mode<synchronous>, transform_indices = @transform_9, window_bounds = array<i64: 512, 128>}, {transform_indices = @transform_10, window_bounds = array<i64: 1, 8, 128>}]} {
    %c0_i32 = arith.constant 0 : i32
    %0 = arith.cmpi eq, %arg1, %c0_i32 : i32
    %1 = arith.extui %0 : i1 to i32
    %c0_i32_0 = arith.constant 0 : i32
    %2 = arith.cmpi ne, %1, %c0_i32_0 : i32
    scf.if %2 {
      %c0_27 = arith.constant 0 : index
      %c0_28 = arith.constant 0 : index
      %36 = vector.load %arg2[%c0_27, %c0_28] : memref<8x4xf32, #tpu.memory_space<vmem>>, vector<8x4xf32>
      %c0_29 = arith.constant 0 : index
      %c0_30 = arith.constant 0 : index
      %37 = vector.load %arg4[%c0_29, %c0_30] : memref<4x32xf32, #tpu.memory_space<vmem>>, vector<4x32xf32>
      %cst_31 = arith.constant dense<0.000000e+00> : vector<8x32xf32>
      %38 = tpu.matmul %36, %37, %cst_31 {dimension_numbers = #tpu.dot_dimension_numbers<[1], [0], [0], [1], [0, 0, 1, 1], [], []>} : vector<8x4xf32>, vector<4x32xf32>, vector<8x32xf32> -> vector<8x32xf32>
      %c0_32 = arith.constant 0 : index
      %c0_33 = arith.constant 0 : index
      %39 = vector.load %arg5[%c0_32, %c0_33] : memref<1x32xf32, #tpu.memory_space<vmem>>, vector<1x32xf32>
      %40 = vector.broadcast %39 : vector<1x32xf32> to vector<8x32xf32>
      %41 = arith.addf %38, %40 : vector<8x32xf32>
      %cst_34 = arith.constant 0.000000e+00 : f32
      %42 = vector.broadcast %cst_34 : f32 to vector<8x32xf32>
      %43 = arith.cmpf ogt, %41, %42 : vector<8x32xf32>
      %cst_35 = arith.constant 0.000000e+00 : f32
      %44 = vector.broadcast %cst_35 : f32 to vector<8x32xf32>
      %45 = arith.minimumf %41, %44 : vector<8x32xf32>
      %46 = math.exp %45 : vector<8x32xf32>
      %cst_36 = arith.constant 1.000000e+00 : f32
      %47 = vector.broadcast %cst_36 : f32 to vector<8x32xf32>
      %48 = arith.subf %46, %47 : vector<8x32xf32>
      %49 = arith.select %43, %41, %48 : vector<8x32xi1>, vector<8x32xf32>
      %c0_37 = arith.constant 0 : index
      %c0_38 = arith.constant 0 : index
      %50 = vector.load %arg6[%c0_37, %c0_38] : memref<32x512xf32, #tpu.memory_space<vmem>>, vector<32x512xf32>
      %cst_39 = arith.constant dense<0.000000e+00> : vector<8x512xf32>
      %51 = tpu.matmul %49, %50, %cst_39 {dimension_numbers = #tpu.dot_dimension_numbers<[1], [0], [0], [1], [0, 0, 1, 1], [], []>} : vector<8x32xf32>, vector<32x512xf32>, vector<8x512xf32> -> vector<8x512xf32>
      %c0_40 = arith.constant 0 : index
      %c0_41 = arith.constant 0 : index
      %52 = vector.load %arg7[%c0_40, %c0_41] : memref<1x512xf32, #tpu.memory_space<vmem>>, vector<1x512xf32>
      %53 = vector.broadcast %52 : vector<1x512xf32> to vector<8x512xf32>
      %54 = arith.addf %51, %53 : vector<8x512xf32>
      %c0_42 = arith.constant 0 : index
      %c0_43 = arith.constant 0 : index
      %55 = vector.load %arg13[%c0_42, %c0_43] : memref<8x512xf32, #tpu.memory_space<vmem>>, vector<8x512xf32>
      tpu.vector_store %arg13[%c0_42, %c0_43], %54 {strides = array<i32>} : memref<8x512xf32, #tpu.memory_space<vmem>>, vector<8x512xf32>,
      %c0_44 = arith.constant 0 : index
      %c0_45 = arith.constant 0 : index
      %56 = vector.load %arg10[%c0_44, %c0_45] : memref<512x128xf32, #tpu.memory_space<vmem>>, vector<512x128xf32>
      %cst_46 = arith.constant dense<0.000000e+00> : vector<8x128xf32>
      %57 = tpu.matmul %54, %56, %cst_46 {dimension_numbers = #tpu.dot_dimension_numbers<[1], [0], [0], [1], [0, 0, 1, 1], [], []>} : vector<8x512xf32>, vector<512x128xf32>, vector<8x128xf32> -> vector<8x128xf32>
      %c0_47 = arith.constant 0 : index
      %c0_48 = arith.constant 0 : index
      %58 = vector.load %arg14[%c0_47, %c0_48] : memref<8x128xf32, #tpu.memory_space<vmem>>, vector<8x128xf32>
      tpu.vector_store %arg14[%c0_47, %c0_48], %57 {strides = array<i32>} : memref<8x128xf32, #tpu.memory_space<vmem>>, vector<8x128xf32>,
    } else {
    }
    %c0 = arith.constant 0 : index
    %c0_1 = arith.constant 0 : index
    %3 = vector.load %arg13[%c0, %c0_1] : memref<8x512xf32, #tpu.memory_space<vmem>>, vector<8x512xf32>
    %c0_2 = arith.constant 0 : index
    %c0_3 = arith.constant 0 : index
    %c0_4 = arith.constant 0 : index
    %4 = vector.load %arg3[%c0_2, %c0_3, %c0_4] : memref<1x8x8xf32, #tpu.memory_space<vmem>>, vector<1x8x8xf32>
    %5 = vector.shape_cast %4 : vector<1x8x8xf32> to vector<8x8xf32>
    %c0_5 = arith.constant 0 : index
    %c0_6 = arith.constant 0 : index
    %6 = vector.load %arg14[%c0_5, %c0_6] : memref<8x128xf32, #tpu.memory_space<vmem>>, vector<8x128xf32>
    %c0_7 = arith.constant 0 : index
    %c0_8 = arith.constant 0 : index
    %7 = vector.load %arg8[%c0_7, %c0_8] : memref<8x128xf32, #tpu.memory_space<vmem>>, vector<8x128xf32>
    %cst = arith.constant dense<0.000000e+00> : vector<8x128xf32>
    %8 = tpu.matmul %5, %7, %cst {dimension_numbers = #tpu.dot_dimension_numbers<[1], [0], [0], [1], [0, 0, 1, 1], [], []>} : vector<8x8xf32>, vector<8x128xf32>, vector<8x128xf32> -> vector<8x128xf32>
    %c0_9 = arith.constant 0 : index
    %c0_10 = arith.constant 0 : index
    %9 = vector.load %arg9[%c0_9, %c0_10] : memref<128x256xf32, #tpu.memory_space<vmem>>, vector<128x256xf32>
    %cst_11 = arith.constant dense<0.000000e+00> : vector<8x256xf32>
    %10 = tpu.matmul %6, %9, %cst_11 {dimension_numbers = #tpu.dot_dimension_numbers<[1], [0], [0], [1], [0, 0, 1, 1], [], []>} : vector<8x128xf32>, vector<128x256xf32>, vector<8x256xf32> -> vector<8x256xf32>
    %11 = vector.extract_strided_slice %3 {offsets = [0, 0], sizes = [8, 128], strides = [1, 1]} : vector<8x512xf32> to vector<8x128xf32>
    %12 = arith.mulf %11, %8 : vector<8x128xf32>
    %c0_12 = arith.constant 0 : index
    %c0_13 = arith.constant 0 : index
    %13 = vector.load %arg11[%c0_12, %c0_13] : memref<512x128xf32, #tpu.memory_space<vmem>>, vector<128x128xf32>
    %cst_14 = arith.constant dense<0.000000e+00> : vector<8x128xf32>
    %14 = tpu.matmul %12, %13, %cst_14 {dimension_numbers = #tpu.dot_dimension_numbers<[1], [0], [0], [1], [0, 0, 1, 1], [], []>} : vector<8x128xf32>, vector<128x128xf32>, vector<8x128xf32> -> vector<8x128xf32>
    %15 = vector.extract_strided_slice %3 {offsets = [0, 128], sizes = [8, 256], strides = [1, 1]} : vector<8x512xf32> to vector<8x256xf32>
    %16 = arith.mulf %15, %10 : vector<8x256xf32>
    %c128 = arith.constant 128 : index
    %c0_15 = arith.constant 0 : index
    %17 = vector.load %arg11[%c128, %c0_15] : memref<512x128xf32, #tpu.memory_space<vmem>>, vector<256x128xf32>
    %cst_16 = arith.constant dense<0.000000e+00> : vector<8x128xf32>
    %18 = tpu.matmul %16, %17, %cst_16 {dimension_numbers = #tpu.dot_dimension_numbers<[1], [0], [0], [1], [0, 0, 1, 1], [], []>} : vector<8x256xf32>, vector<256x128xf32>, vector<8x128xf32> -> vector<8x128xf32>
    %19 = arith.addf %14, %18 : vector<8x128xf32>
    %20 = vector.extract_strided_slice %3 {offsets = [0, 384], sizes = [8, 128], strides = [1, 1]} : vector<8x512xf32> to vector<8x128xf32>
    %c384 = arith.constant 384 : index
    %c0_17 = arith.constant 0 : index
    %21 = vector.load %arg11[%c384, %c0_17] : memref<512x128xf32, #tpu.memory_space<vmem>>, vector<128x128xf32>
    %cst_18 = arith.constant dense<0.000000e+00> : vector<8x128xf32>
    %22 = tpu.matmul %20, %21, %cst_18 {dimension_numbers = #tpu.dot_dimension_numbers<[1], [0], [0], [1], [0, 0, 1, 1], [], []>} : vector<8x128xf32>, vector<128x128xf32>, vector<8x128xf32> -> vector<8x128xf32>
    %23 = arith.addf %19, %22 : vector<8x128xf32>
    %cst_19 = arith.constant 0.000000e+00 : f32
    %24 = vector.broadcast %cst_19 : f32 to vector<8x128xf32>
    %25 = arith.cmpf ogt, %23, %24 : vector<8x128xf32>
    %cst_20 = arith.constant 0.000000e+00 : f32
    %26 = vector.broadcast %cst_20 : f32 to vector<8x128xf32>
    %27 = arith.minimumf %23, %26 : vector<8x128xf32>
    %28 = math.exp %27 : vector<8x128xf32>
    %cst_21 = arith.constant 1.000000e+00 : f32
    %29 = vector.broadcast %cst_21 : f32 to vector<8x128xf32>
    %30 = arith.subf %28, %29 : vector<8x128xf32>
    %31 = arith.select %25, %23, %30 : vector<8x128xi1>, vector<8x128xf32>
    %c0_22 = arith.constant 0 : index
    %c0_23 = arith.constant 0 : index
    %32 = vector.load %arg14[%c0_22, %c0_23] : memref<8x128xf32, #tpu.memory_space<vmem>>, vector<8x128xf32>
    tpu.vector_store %arg14[%c0_22, %c0_23], %31 {strides = array<i32>} : memref<8x128xf32, #tpu.memory_space<vmem>>, vector<8x128xf32>,
    %c0_24 = arith.constant 0 : index
    %c0_25 = arith.constant 0 : index
    %c0_26 = arith.constant 0 : index
    %33 = vector.load %arg12[%c0_24, %c0_25, %c0_26] : memref<1x8x128xf32, #tpu.memory_space<vmem>>, vector<1x8x128xf32>
    %34 = vector.shape_cast %33 : vector<1x8x128xf32> to vector<8x128xf32>
    %35 = vector.shape_cast %31 : vector<8x128xf32> to vector<1x8x128xf32>
    tpu.vector_store %arg12[%c0_24, %c0_25, %c0_26], %35 {strides = array<i32>} : memref<1x8x128xf32, #tpu.memory_space<vmem>>, vector<1x8x128xf32>,
    return
  }
  func.func @transform_0(%arg0: i32, %arg1: i32) -> (i32, i32) {
    %c0_i32 = arith.constant 0 : i32
    %c0_i32_0 = arith.constant 0 : i32
    return %arg0, %c0_i32 : i32, i32
  }
  func.func @transform_1(%arg0: i32, %arg1: i32) -> (i32, i32, i32) {
    %c0_i32 = arith.constant 0 : i32
    %c0_i32_0 = arith.constant 0 : i32
    return %arg1, %arg0, %c0_i32 : i32, i32, i32
  }
  func.func @transform_2(%arg0: i32, %arg1: i32) -> (i32, i32) {
    %c0_i32 = arith.constant 0 : i32
    %c0_i32_0 = arith.constant 0 : i32
    %c0_i32_1 = arith.constant 0 : i32
    return %c0_i32, %c0_i32_0 : i32, i32
  }
  func.func @transform_3(%arg0: i32, %arg1: i32) -> (i32, i32) {
    %c0_i32 = arith.constant 0 : i32
    %c0_i32_0 = arith.constant 0 : i32
    %c0_i32_1 = arith.constant 0 : i32
    return %c0_i32, %c0_i32_0 : i32, i32
  }
  func.func @transform_4(%arg0: i32, %arg1: i32) -> (i32, i32) {
    %c0_i32 = arith.constant 0 : i32
    %c0_i32_0 = arith.constant 0 : i32
    %c0_i32_1 = arith.constant 0 : i32
    return %c0_i32, %c0_i32_0 : i32, i32
  }
  func.func @transform_5(%arg0: i32, %arg1: i32) -> (i32, i32) {
    %c0_i32 = arith.constant 0 : i32
    %c0_i32_0 = arith.constant 0 : i32
    %c0_i32_1 = arith.constant 0 : i32
    return %c0_i32, %c0_i32_0 : i32, i32
  }
  func.func @transform_6(%arg0: i32, %arg1: i32) -> (i32, i32) {
    %c0_i32 = arith.constant 0 : i32
    %c0_i32_0 = arith.constant 0 : i32
    %c0_i32_1 = arith.constant 0 : i32
    return %c0_i32, %c0_i32_0 : i32, i32
  }
  func.func @transform_7(%arg0: i32, %arg1: i32) -> (i32, i32) {
    %c0_i32 = arith.constant 0 : i32
    %c0_i32_0 = arith.constant 0 : i32
    %c0_i32_1 = arith.constant 0 : i32
    return %c0_i32, %c0_i32_0 : i32, i32
  }
  func.func @transform_8(%arg0: i32, %arg1: i32) -> (i32, i32) {
    %c0_i32 = arith.constant 0 : i32
    %c0_i32_0 = arith.constant 0 : i32
    %c0_i32_1 = arith.constant 0 : i32
    return %c0_i32, %c0_i32_0 : i32, i32
  }
  func.func @transform_9(%arg0: i32, %arg1: i32) -> (i32, i32) {
    %c0_i32 = arith.constant 0 : i32
    %c0_i32_0 = arith.constant 0 : i32
    %c0_i32_1 = arith.constant 0 : i32
    return %c0_i32, %c0_i32_0 : i32, i32
  }
  func.func @transform_10(%arg0: i32, %arg1: i32) -> (i32, i32, i32) {
    %c0_i32 = arith.constant 0 : i32
    %c0_i32_0 = arith.constant 0 : i32
    return %arg1, %arg0, %c0_i32 : i32, i32, i32
  }
}

</mosaic_0001>

<bundles_post_ra>
// kernel: tpu_custom_call.1
= control target key start
LH: loop header
LB: loop body
LE: loop exit
PB: predicated region body
PF: predicated region fallthrough
CT: control target
= control target key end

     0   :  { %s2787_s0 = inlined_call_operand.vmem [shape: f32[8,4], index: 0, kind: input, shape index: {}]   ;;  %s2788_s1 = inlined_call_operand.hbm [shape: f32[3,8,8], index: 1, kind: input, shape index: {}]   ;;  %s2789_s2 = inlined_call_operand.vmem [shape: f32[4,32], index: 2, kind: input, shape index: {}]   ;;  %s2790_s3 = inlined_call_operand.vmem [shape: f32[1,32], index: 3, kind: input, shape index: {}]   ;;  %s2791_s4 = inlined_call_operand.hbm [shape: f32[32,512], index: 4, kind: input, shape index: {}]   ;;  %s2792_s5 = inlined_call_operand.vmem [shape: f32[1,512], index: 5, kind: input, shape index: {}]   ;;  %s2793_s6 = inlined_call_operand.vmem [shape: f32[8,128], index: 6, kind: input, shape index: {}]   ;;  %s2794_s7 = inlined_call_operand.hbm [shape: f32[128,256], index: 7, kind: input, shape index: {}]   ;;  %s2795_s8 = inlined_call_operand.hbm [shape: f32[512,128], index: 8, kind: input, shape index: {}]   ;;  %s2796_s9 = inlined_call_operand.hbm [shape: f32[512,128], index: 9, kind: input, shape index: {}]   ;;  %s2797_s10 = inlined_call_operand.hbm [shape: f32[3,8,128], index: 10, kind: output, shape index: {}]  }
   0x1   :  { %2806 = sst [smem:[#allocation18_spill]] %s2791_s4 }
   0x2   :  { %2807 = sst [smem:[#allocation19_spill]] %s2792_s5 }
   0x3   :  { %2808 = sst [smem:[#allocation20_spill]] %s2793_s6 }
   0x4   :  { %2809 = sst [smem:[#allocation21_spill]] %s2794_s7 }
   0x5   :  { %2810 = sst [smem:[#allocation22_spill]] %s2797_s10 }
   0x6   :  { %15 = vsyncpa [#allocation5], 0 }
   0x7   :  { %17 = vsyncpa [#allocation5 + $0x1], 0 }
   0x8   :  { %18 = vsyncpa [#allocation8], 0 }
   0x9   :  { %19 = vsyncpa [#allocation11], 0 }
   0xa   :  { %20 = vsyncpa [#allocation6], 0 }
   0xb   :  { %22 = vsyncpa [#allocation6 + $0x1], 0  ;;  %s2448_s13 = smov 0   ;;  %s2450_s14 = smov 0  }
   0xc   :  { %s2452_s15 = smov 0   ;;  %s2454_s16 = smov 0  }
   0xd   :  { %s2456_s17 = smov 0   ;;  %s2458_s18 = smov 0  }
   0xe LB: > { %s2801_s19 = sadd.s32 4294967295, %s2374_s18   ;;  %p1577_p0 = scmp.ge.s32.totalorder %s2374_s18, 1  ;;  %s2374_s18 = sphi %s2458_s18, %s28_s18   ;;  %s2370_s17 = sphi %s2456_s17, %s2837_s17   ;;  %s2366_s16 = sphi %s2454_s16, %s2836_s16   ;;  %s2362_s15 = sphi %s2452_s15, %s2835_s15   ;;  %s2358_s14 = sphi %s2450_s14, %s2834_s14   ;;  %s2354_s13 = sphi %s2448_s13, %s2833_s13  }
   0xf   : > { %p2482_p1 = scmp.eq.s32.totalorder %s2801_s19, 0  ;;  %p295_p2 = scmp.lt.s32.totalorder %s2374_s18, 4 }
  0x10   : > { %s2376_s22 = smov [#allocation7]   ;;  %s2377_s25 = smov [#allocation10]  }
  0x11   : > { %s2811_s20 = scalar_select %p2482_p1, 1, 0 }
  0x12   : > { %p2487_p3 = pnand %p1577_p0, %p295_p2  ;;  %s320_s23 = sshll.u32 %s2376_s22, 4  ;;  %s321_s23 = int_to_ptr.vmem [resolvable:$true] %s320_s23 }
  0x13   : > { %s352_s26 = sshll.u32 %s2377_s25, 4  ;;  %s2814_s4 = sld [smem:[#allocation18_spill]]  ;;  %s2499_s26 = int_to_ptr.vmem [resolvable:$true] %s352_s26 }
  0x14   : > { %s2812_s21 = scalar_select %p2487_p3, 1, 0 }
  0x15   : > { %p2044_p4 = pneg %p2487_p3 }
  0x17   : > { %p2495_p5 = pnand %p2044_p4, %p2482_p1 }
  0x19   : > { %s2142_s29 = scalar_lea.hbm %s2814_s4, 2048  ;;  %p2509_p7 = pneg %p2495_p5 }
  0x1a   : > { %p2143_p6 = scmp.ne.s32.totalorder %s2814_s4, %s2142_s29  ;;  %p2149_p10 = scmp.lt.u32.totalorder %s2142_s29, %s2814_s4 }
  0x1c   : > { %p2145_p8 = pnand %p2509_p7, %p2143_p6 }
  0x1e   : > { %p2146_p9 = pneg %p2145_p8 }
  0x20   : > { %p2151_p11 = pnand %p2149_p10, %p2146_p9 }
  0x22   : > { %2154 = shalt.err (!%p2151_p11)
}
  0x23   : > { %s2155_s27 = scalar_lea.vmem %s321_s23, 2048  ;;  %p2163_p2 = scmp.lt.s32.totalorder %s321_s23, %s321_s23 }
  0x24   : > { %p2156_p12 = scmp.ne.s32.totalorder %s321_s23, %s2155_s27  ;;  %p2164_p4 = scmp.lt.s32.totalorder %s2155_s27, %s2155_s27 }
  0x26   : > { %p2158_p13 = pnand %p2156_p12, %p2509_p7  ;;  %p2165_p3 = por %p2164_p4, %p2163_p2 }
  0x28   : > { %p2159_p0 = pneg %p2158_p13 }
  0x2a   : > { %p2166_p1 = pnand %p2165_p3, %p2159_p0 }
  0x2c   : > { %2169 = shalt.err (!%p2166_p1)
}
  0x2d   : > { %s2378_s28 = smov 512   ;;  %s2379_s30 = smov 32  }
  0x2e   : > { %2047 = dma.hbm_to_vmem [thread:$0]  (!%p2495_p5), %s2814_s4, 2048, %s321_s23, [#allocation8], %s2378_s28, %s2378_s28, %s2379_s30  }
  0x2f   : > { %s2170_s19 = scalar_lea.hbm %s2795_s8, 8192 }
  0x30   : > { %p2171_p6 = scmp.ne.s32.totalorder %s2795_s8, %s2170_s19  ;;  %p2177_p8 = scmp.lt.u32.totalorder %s2170_s19, %s2795_s8 }
  0x32   : > { %p2173_p3 = pnand %p2171_p6, %p2509_p7 }
  0x34   : > { %p2174_p1 = pneg %p2173_p3 }
  0x36   : > { %p2179_p9 = pnand %p2177_p8, %p2174_p1 }
  0x38   : > { %2182 = shalt.err (!%p2179_p9)
}
  0x39   : > { %s2183_s23 = scalar_lea.vmem %s2499_s26, 8192  ;;  %p2191_p13 = scmp.lt.s32.totalorder %s2499_s26, %s2499_s26 }
  0x3a   : > { %p2184_p10 = scmp.ne.s32.totalorder %s2499_s26, %s2183_s23  ;;  %p2192_p0 = scmp.lt.s32.totalorder %s2183_s23, %s2183_s23 }
  0x3c   : > { %p2186_p11 = pnand %p2184_p10, %p2509_p7  ;;  %p2193_p2 = por %p2192_p0, %p2191_p13 }
  0x3e   : > { %p2187_p12 = pneg %p2186_p11 }
  0x40   : > { %p2194_p4 = pnand %p2193_p2, %p2187_p12 }
  0x42   : > { %2197 = shalt.err (!%p2194_p4)
}
  0x43   : > { %s2803_s6 = smov 128   ;;  %s2804_s5 = smov 8  }
  0x44   : > { %2053 = dma.hbm_to_vmem [thread:$0]  (!%p2495_p5), %s2795_s8, 8192, %s2499_s26, [#allocation11], %s2803_s6, %s2803_s6, %s2804_s5  }
  0x45   : > { %s2382_s28 = smov [#allocation9]   ;;  %s2816_s7 = sld [smem:[#allocation21_spill]] }
  0x46   : > { %s339_s30 = sshll.u32 %s2382_s28, 4  ;;  %s340_s30 = int_to_ptr.vmem [resolvable:$true] %s339_s30 }
  0x4b   : > { %s2198_s22 = scalar_lea.hbm %s2816_s7, 4096 }
  0x4c   : > { %p2199_p6 = scmp.ne.s32.totalorder %s2816_s7, %s2198_s22  ;;  %p2205_p8 = scmp.lt.u32.totalorder %s2198_s22, %s2816_s7 }
  0x4e   : > { %p2201_p3 = pnand %p2199_p6, %p2509_p7 }
  0x50   : > { %p2202_p1 = pneg %p2201_p3 }
  0x52   : > { %p2207_p9 = pnand %p2205_p8, %p2202_p1 }
  0x54   : > { %2210 = shalt.err (!%p2207_p9)
}
  0x55   : > { %s2211_s26 = scalar_lea.vmem %s340_s30, 4096  ;;  %p2219_p13 = scmp.lt.s32.totalorder %s340_s30, %s340_s30 }
  0x56   : > { %p2212_p10 = scmp.ne.s32.totalorder %s340_s30, %s2211_s26  ;;  %p2220_p0 = scmp.lt.s32.totalorder %s2211_s26, %s2211_s26 }
  0x58   : > { %p2214_p11 = pnand %p2212_p10, %p2509_p7  ;;  %p2221_p2 = por %p2220_p0, %p2219_p13 }
  0x5a   : > { %p2215_p12 = pneg %p2214_p11 }
  0x5c   : > { %p2222_p4 = pnand %p2221_p2, %p2215_p12 }
  0x5e   : > { %2225 = shalt.err (!%p2222_p4)
}
  0x5f   : > { %s2383_s10 = smov 256   ;;  %s2384_s19 = smov 16  }
  0x60   : > { %2050 = dma.hbm_to_vmem [thread:$0]  (!%p2495_p5), %s2816_s7, 4096, %s340_s30, [#allocation8], %s2383_s10, %s2383_s10, %s2384_s19  }
  0x61   : > { %s2385_s11 = smov [#allocation12]   ;;  %s2226_s27 = scalar_lea.hbm %s2796_s9, 8192 }
  0x62   : > { %s365_s29 = sshll.u32 %s2385_s11, 4  ;;  %p2227_p6 = scmp.ne.s32.totalorder %s2796_s9, %s2226_s27  ;;  %s366_s29 = int_to_ptr.vmem [resolvable:$true] %s365_s29 }
  0x63   : > { %p2233_p8 = scmp.lt.u32.totalorder %s2226_s27, %s2796_s9 }
  0x64   : > { %p2229_p3 = pnand %p2227_p6, %p2509_p7 }
  0x66   : > { %p2230_p1 = pneg %p2229_p3 }
  0x68   : > { %p2235_p9 = pnand %p2233_p8, %p2230_p1 }
  0x6a   : > { %2238 = shalt.err (!%p2235_p9)
}
  0x6b   : > { %s2239_s30 = scalar_lea.vmem %s366_s29, 8192  ;;  %p2247_p13 = scmp.lt.s32.totalorder %s366_s29, %s366_s29 }
  0x6c   : > { %p2240_p10 = scmp.ne.s32.totalorder %s366_s29, %s2239_s30  ;;  %p2248_p0 = scmp.lt.s32.totalorder %s2239_s30, %s2239_s30 }
  0x6e   : > { %p2242_p11 = pnand %p2240_p10, %p2509_p7  ;;  %p2249_p2 = por %p2248_p0, %p2247_p13 }
  0x70   : > { %p2243_p12 = pneg %p2242_p11 }
  0x72   : > { %p2250_p4 = pnand %p2249_p2, %p2243_p12 }
  0x74   : > { %2253 = shalt.err (!%p2250_p4)
}
  0x75   : > { %s2817_s10 = smov 8   ;;  %s2818_s19 = smov 128  }
  0x76   : > { %2056 = dma.hbm_to_vmem [thread:$0]  (!%p2495_p5), %s2796_s9, 8192, %s366_s29, [#allocation11], %s2818_s19, %s2818_s19, %s2817_s10  }
  0x77   : > { %s1576_s24 = sadd.s32 4294967294, %s2374_s18   ;;  %s37_s12 = sadd.s32 1, %s2370_s17 }
  0x78   : > { %p38_p7 = scmp.ge.s32.totalorder %s37_s12, 3  ;;  %s75_s4 = sadd.s32 1, %s2362_s15 }
  0x79   : > { %p82_p6 = scmp.ne.s32.totalorder %s2362_s15, %s2358_s14  ;;  %p83_p3 = scmp.eq.s32.totalorder %s2374_s18, 0 }
  0x7a   : > { %s2839_s12 = smov (%p38_p7, %s37_s12), 0  ;;  %p88_p8 = scmp.ne.s32.totalorder %s2358_s14, %s2354_s13 }
  0x7b   : > { %p2598_p1 = por %p83_p3, %p82_p6  ;;  %s70_s11 = ssub.s32 %s2370_s17, %s2839_s12 }
  0x7c   : > { %s2820_s29 = sadd.s32 4294967295, %s2374_s18   ;;  %p73_p9 = scmp.eq.s32.totalorder %s70_s11, 0 }
  0x7d   : > { %p282_p5 = scmp.eq.s32.totalorder %s2820_s29, 2  ;;  %p2821_p10 = scmp.ne.s32.totalorder %s2811_s20, 0 }
  0x7e   : > { %p288_p13 = scmp.eq.s32.totalorder %s1576_s24, 2  ;;  %p2069_p2 = scmp.lt.s32.totalorder %s2374_s18, 3 }
  0x7f   : > { %p2610_p11 = por %p2821_p10, %p88_p8  ;;  %p2614_p12 = por %p282_p5, %p82_p6 }
  0x80   : > { %s2619_s27 = scalar_select %p73_p9, %s2362_s15, %s75_s4  }
  0x81   : > { %s2823_s25 = scalar_select %p2614_p12, 1, 0 }
  0x82   : > { %p2621_p0 = por %p288_p13, %p88_p8  ;;  %s379_s26 = sand.u32 1, %s2362_s15  }
  0x83   : > { %s1585_s30 = sshll.u32 %s2370_s17, 7  ;;  %s1584_s10 = sshll.u32 %s379_s26, 3 }
  0x84   : > { %s2824_s23 = scalar_select %p2621_p0, 1, 0 }
  0x85   : > { %s2631_s5 = scalar_lea.hbm %s2788_s1, %s1585_s30  ;;  %s383_s24 = scalar_lea.vmem [#allocation4], %s1584_s10 }
  0x86   : > { %s391_s4 = sshll.u32 %s383_s24, 4  ;;  %p2635_p4 = pnand %p2069_p2, %p2598_p1  ;;  %s2639_s4 = int_to_ptr.vmem [resolvable:$true] %s391_s4 }
  0x87   : > { %s380_s29 = scalar_lea.sflag [#allocation5], %s379_s26  ;;  %s2254_s7 = scalar_lea.hbm %s2631_s5, 128 }
  0x88   : > { %p2255_p7 = scmp.ne.s32.totalorder %s2631_s5, %s2254_s7  ;;  %p2256_p6 = pneg %p2635_p4 }
  0x89   : > { %s2259_s28 = scalar_lea.hbm %s2788_s1, 384  ;;  %p2260_p1 = scmp.lt.u32.totalorder %s2631_s5, %s2788_s1 }
  0x8a   : > { %p2257_p3 = pnand %p2256_p6, %p2255_p7  ;;  %p2261_p5 = scmp.lt.u32.totalorder %s2259_s28, %s2254_s7 }
  0x8b   : > { %p2263_p10 = scmp.lt.u32.totalorder %s2254_s7, %s2631_s5 }
  0x8c   : > { %p2258_p8 = pneg %p2257_p3  ;;  %p2262_p9 = por %p2261_p5, %p2260_p1 }
  0x8e   : > { %p2264_p13 = por %p2263_p10, %p2262_p9 }
  0x90   : > { %p2265_p2 = pnand %p2264_p13, %p2258_p8 }
  0x92   : > { %2268 = shalt.err (!%p2265_p2)
}
  0x93   : > { %s2269_s26 = scalar_lea.vmem %s2639_s4, 128  ;;  %s2386_s24 = smov [#allocation4]  }
  0x94   : > { %p2270_p7 = scmp.ne.s32.totalorder %s2639_s4, %s2269_s26  ;;  %s2274_s30 = sshll.u32 %s2386_s24, 4  ;;  %s2275_s30 = int_to_ptr.vmem [resolvable:$false] %s2274_s30 }
  0x95   : > { %s2276_s10 = scalar_lea.vmem %s2275_s30, 256  ;;  %p2277_p12 = scmp.lt.s32.totalorder %s2639_s4, %s2275_s30 }
  0x96   : > { %p2272_p3 = pnand %p2270_p7, %p2256_p6  ;;  %p2278_p1 = scmp.lt.s32.totalorder %s2276_s10, %s2269_s26 }
  0x98   : > { %p2273_p0 = pneg %p2272_p3  ;;  %p2279_p5 = por %p2278_p1, %p2277_p12 }
  0x9a   : > { %p2280_p9 = pnand %p2279_p5, %p2273_p0 }
  0x9c   : > { %2283 = shalt.err (!%p2280_p9)
}
  0x9d   : > { %2060 = dma.hbm_to_vmem [thread:$0]  (!%p2635_p4), %s2631_s5, 128, %s2639_s4, %s380_s29  }
  0x9e   : > { %p2826_p8 = scmp.ne.s32.totalorder %s2812_s21, 0 }
  0x9f   : > { %s2669_s7 = sand.u32 (!%p2826_p8), 1, %s2358_s14  }
  0xa0   : > { %400 = sbr.rel (%p2826_p8) target bundleno = 1348 (0x544), region = 60  ;;  %s1587_s28 = sshll.u32 (!%p2826_p8), %s2669_s7, 3 }
  0xa1   : > { %s403_s19 = scalar_lea.sflag (!%p2826_p8), [#allocation5], %s2669_s7  ;;  %s2673_s6 = scalar_lea.vmem (!%p2826_p8), [#allocation4], %s1587_s28 }
  0xa7   : > { %2337 = dma.done.wait (%p2610_p11), %s403_s19, 128  }
  0xa8   : > { %2339 = vsyncadd (%p2610_p11), %s403_s19, 4294967168  ;;  %p2827_p12 = scmp.ne.s32.totalorder %s2811_s20, 0 }
  0xaa   : > { %2341 = dma.done.wait (%p2827_p12), [#allocation8], 6144  }
  0xab   : > { %2343 = vsyncadd (%p2827_p12), [#allocation8], 4294961152 }
  0xac   : > { %2345 = dma.done.wait (%p2827_p12), [#allocation11], 16384  }
  0xad   : > { %2347 = vsyncadd (%p2827_p12), [#allocation11], 4294950912  ;;  %s2687_s21 = scalar_lea.vmem [#allocation13], %s1587_s28  ;;  %p1593_p0 = scmp.ne.s32.totalorder %s2366_s16, 0 }
  0xae   : > { %v472_v0 = vld [vmem:[%s2789_s2] sm:$0xf] (!%p1593_p0)  ;;  %vm484_vm0 = vcmask (!%p1593_p0), 1043456   ;;  %v2387_v2 = vmov (!%p1593_p0), 0.0   ;;  %vm2388_vm1 = vmmov (!%p1593_p0), 0   ;;  %vm480_vm2 = vcmask (!%p1593_p0), 31744  }
  0xaf   : > { %470 = sbr.rel (%p1593_p0) target bundleno = 843 (0x34b), region = 84  ;;  %v471_v1 = vld [vmem:[%s2787_s0] sm:$0xff] (!%p1593_p0)  ;;  %1749 = vmatprep.subr.mxu0 (!%p1593_p0), %v2387_v2  ;;  %1751 = vmatprep.mubr.msk.f32.mxu0 (!%p1593_p0), %vm2388_vm1, %v2387_v2  ;;  %v565_v3 = vld [vmem:[#allocation7 + $0x8] sm:$0xff] (!%p1593_p0)  ;;  %v564_v8 = vld [vmem:[#allocation7] sm:$0xff] (!%p1593_p0)  ;;  %vm602_vm3 = vcmask (!%p1593_p0), 261120   ;;  %s2828_s30 = sld [smem:[#allocation19_spill]] (!%p1593_p0) }
  0xb0   : > { %1750 = vmatpush3.msk.msra.mxu0 (!%p1593_p0), %vm484_vm0, %v472_v0  ;;  %670 = vmatprep.mubr.f32.mxu1 (!%p1593_p0), %v2387_v2  ;;  %v569_v4 = vld [vmem:[#allocation7 + $0x28] sm:$0xff] (!%p1593_p0)  ;;  %v567_v5 = vld [vmem:[#allocation7 + $0x18] sm:$0xff] (!%p1593_p0)  ;;  %v568_v9 = vld [vmem:[#allocation7 + $0x20] sm:$0xff] (!%p1593_p0) }
  0xb1   : > { %1752 = vmatmul.mubr.msk.f32.vlgmr.msra.gmra.mrb[0].mxu0 (!%p1593_p0), %vm480_vm2, %v471_v1  ;;  %v1829_v6 = vpack.c.bf16 (!%p1593_p0), %v569_v4, %v565_v3  ;;  %v571_v7 = vld [vmem:[#allocation7 + $0x38] sm:$0xff] (!%p1593_p0)  ;;  %v1831_v11 = vpack.c.bf16 (!%p1593_p0), %v568_v9, %v564_v8  ;;  %v566_v12 = vld [vmem:[#allocation7 + $0x10] sm:$0xff] (!%p1593_p0)  ;;  %v573_v14 = vld [vmem:[#allocation7 + $0x48] sm:$0xff] (!%p1593_p0) }
  0xb2   : > { %741 = vmatprep.mubr.f32.mxu0 (!%p1593_p0), %v2387_v2  ;;  %v1837_v10 = vpack.c.bf16 (!%p1593_p0), %v571_v7, %v567_v5  ;;  %v570_v13 = vld [vmem:[#allocation7 + $0x30] sm:$0xff] (!%p1593_p0)  ;;  %v577_v16 = vld [vmem:[#allocation7 + $0x68] sm:$0xff] (!%p1593_p0)  ;;  %v575_v17 = vld [vmem:[#allocation7 + $0x58] sm:$0xff] (!%p1593_p0) }
  0xb3   : > { %1830 = vmatprep.subr.bf16.mxu1 (!%p1593_p0), %v1829_v6  ;;  %v1839_v15 = vpack.c.bf16 (!%p1593_p0), %v570_v13, %v566_v12  ;;  %v579_v18 = vld [vmem:[#allocation7 + $0x78] sm:$0xff] (!%p1593_p0)  ;;  %v1833_v19 = vpack.c.bf16 (!%p1593_p0), %v577_v16, %v573_v14  ;;  %v572_v21 = vld [vmem:[#allocation7 + $0x40] sm:$0xff] (!%p1593_p0)  ;;  %v574_v23 = vld [vmem:[#allocation7 + $0x50] sm:$0xff] (!%p1593_p0) }
  0xb4   : > { %1838 = vmatprep.subr.bf16.mxu0 (!%p1593_p0), %v1837_v10  ;;  %1832 = vmatpush1.bf16.msra.mxu1 (!%p1593_p0), %v1831_v11  ;;  %v1841_v20 = vpack.c.bf16 (!%p1593_p0), %v579_v18, %v575_v17  ;;  %v576_v22 = vld [vmem:[#allocation7 + $0x60] sm:$0xff] (!%p1593_p0)  ;;  %v578_v25 = vld [vmem:[#allocation7 + $0x70] sm:$0xff] (!%p1593_p0)  ;;  %v769_v28 = vld [vmem:[#allocation10 + $0x88] sm:$0xff] (!%p1593_p0) }
  0xb5   : > { %1840 = vmatpush1.bf16.msra.mxu0 (!%p1593_p0), %v1839_v15  ;;  %v1835_v24 = vpack.c.bf16 (!%p1593_p0), %v576_v22, %v572_v21  ;;  %1834 = vmatprep.subr.bf16.mxu1 (!%p1593_p0), %v1833_v19  ;;  %v1843_v26 = vpack.c.bf16 (!%p1593_p0), %v578_v25, %v574_v23  ;;  %v768_v27 = vld [vmem:[#allocation10 + $0x80] sm:$0xff] (!%p1593_p0)  ;;  %v801_v31 = vld [vmem:[#allocation10 + $0x188] sm:$0xff] (!%p1593_p0)  ;;  %v1594_v33 = vld [vmem:[%s2790_s3] ss:$0 sm:$0xff] (!%p1593_p0) }
  0xb6   : > { %1842 = vmatprep.subr.bf16.mxu0 %v1841_v20  ;;  %v800_v29 = vld [vmem:[#allocation10 + $0x180] sm:$0xff]  ;;  %v1845_v30 = vpack.c.bf16 %v769_v28, %v768_v27  ;;  %v753_v40 = vld [vmem:[#allocation10 + $0x8] sm:$0xff]  ;;  %v770_v43 = vld [vmem:[#allocation10 + $0x90] sm:$0xff] }
  0xb7   : > { %v1877_v32 = vpack.c.bf16 %v801_v31, %v800_v29  ;;  %v752_v39 = vld [vmem:[#allocation10] sm:$0xff]  ;;  %v785_v42 = vld [vmem:[#allocation10 + $0x108] sm:$0xff]  ;;  %v771_v44 = vld [vmem:[#allocation10 + $0x98] sm:$0xff] }
  0xb8   : > { %1836 = vmatpush1.bf16.msra.mxu1 %v1835_v24  ;;  %v784_v41 = vld [vmem:[#allocation10 + $0x100] sm:$0xff]  ;;  %v802_v45 = vld [vmem:[#allocation10 + $0x190] sm:$0xff]  ;;  %v803_v46 = vld [vmem:[#allocation10 + $0x198] sm:$0xff]  ;;  %v1847_v49 = vpack.c.bf16 %v753_v40, %v752_v39  ;;  %v1849_v53 = vpack.c.bf16 %v771_v44, %v770_v43 }
  0xb9   : > { %1844 = vmatpush1.bf16.msra.mxu0 %v1843_v26  ;;  %1846 = vmatprep.subr.bf16.mxu1 %v1845_v30  ;;  %v1879_v50 = vpack.c.bf16 %v785_v42, %v784_v41  ;;  %v754_v51 = vld [vmem:[#allocation10 + $0x10] sm:$0xff]  ;;  %v755_v52 = vld [vmem:[#allocation10 + $0x18] sm:$0xff]  ;;  %v1881_v54 = vpack.c.bf16 %v803_v46, %v802_v45  ;;  %v772_v57 = vld [vmem:[#allocation10 + $0xa0] sm:$0xff] }
  0xba   : > { %1878 = vmatprep.subr.bf16.mxu0 %v1877_v32  ;;  %v786_v55 = vld [vmem:[#allocation10 + $0x110] sm:$0xff]  ;;  %v787_v56 = vld [vmem:[#allocation10 + $0x118] sm:$0xff]  ;;  %v773_v59 = vld [vmem:[#allocation10 + $0xa8] sm:$0xff]  ;;  %v1851_v62 = vpack.c.bf16 %v755_v52, %v754_v51 }
  0xbb   : > { %v804_v60 = vld [vmem:[#allocation10 + $0x1a0] sm:$0xff]  ;;  %v805_v61 = vld [vmem:[#allocation10 + $0x1a8] sm:$0xff]  ;;  %v1883_v63 = vpack.c.bf16 %v787_v56, %v786_v55  ;;  %v1853_v2 = vpack.c.bf16 %v773_v59, %v772_v57  ;;  %v774_v6 = vld [vmem:[#allocation10 + $0xb0] sm:$0xff] }
  0xbc   : > { %v756_v0 = vld [vmem:[#allocation10 + $0x20] sm:$0xff]  ;;  %v757_v1 = vld [vmem:[#allocation10 + $0x28] sm:$0xff]  ;;  %v1885_v3 = vpack.c.bf16 %v805_v61, %v804_v60  ;;  %v775_v7 = vld [vmem:[#allocation10 + $0xb8] sm:$0xff] }
  0xbd   : > { %v788_v4 = vld [vmem:[#allocation10 + $0x120] sm:$0xff]  ;;  %v789_v5 = vld [vmem:[#allocation10 + $0x128] sm:$0xff]  ;;  %v806_v8 = vld [vmem:[#allocation10 + $0x1b0] sm:$0xff]  ;;  %v1855_v10 = vpack.c.bf16 %v757_v1, %v756_v0  ;;  %v1857_v14 = vpack.c.bf16 %v775_v7, %v774_v6 }
  0xbe   : > { %v807_v9 = vld [vmem:[#allocation10 + $0x1b8] sm:$0xff]  ;;  %v1887_v11 = vpack.c.bf16 %v789_v5, %v788_v4  ;;  %v758_v12 = vld [vmem:[#allocation10 + $0x30] sm:$0xff]  ;;  %v776_v18 = vld [vmem:[#allocation10 + $0xc0] sm:$0xff]  ;;  %v582_v4 = vlaneseq }
  0xbf   : > { %v759_v13 = vld [vmem:[#allocation10 + $0x38] sm:$0xff]  ;;  %v1889_v15 = vpack.c.bf16 %v807_v9, %v806_v8  ;;  %v790_v16 = vld [vmem:[#allocation10 + $0x130] sm:$0xff]  ;;  %v777_v19 = vld [vmem:[#allocation10 + $0xc8] sm:$0xff] }
  0xc0   : > { %v791_v17 = vld [vmem:[#allocation10 + $0x138] sm:$0xff]  ;;  %v808_v20 = vld [vmem:[#allocation10 + $0x1c0] sm:$0xff]  ;;  %v809_v21 = vld [vmem:[#allocation10 + $0x1c8] sm:$0xff]  ;;  %v1859_v22 = vpack.c.bf16 %v759_v13, %v758_v12  ;;  %v1861_v26 = vpack.c.bf16 %v777_v19, %v776_v18  ;;  %v583_v5 = vshrl.u32 %v582_v4, 7 }
  0xc1   : > { %v1891_v23 = vpack.c.bf16 %v791_v17, %v790_v16  ;;  %v760_v24 = vld [vmem:[#allocation10 + $0x40] sm:$0xff]  ;;  %v761_v25 = vld [vmem:[#allocation10 + $0x48] sm:$0xff]  ;;  %v1893_v27 = vpack.c.bf16 %v809_v21, %v808_v20  ;;  %v778_v30 = vld [vmem:[#allocation10 + $0xd0] sm:$0xff] }
  0xc2   : > { %v792_v28 = vld [vmem:[#allocation10 + $0x140] sm:$0xff]  ;;  %v793_v29 = vld [vmem:[#allocation10 + $0x148] sm:$0xff]  ;;  %v779_v31 = vld [vmem:[#allocation10 + $0xd8] sm:$0xff]  ;;  %v584_v6 = vsub.s32 0, %v583_v5  ;;  %v592_v7 = vsub.s32 2, %v583_v5  ;;  %v588_v9 = vsub.s32 1, %v583_v5 }
  0xc3   : > { %v810_v32 = vld [vmem:[#allocation10 + $0x1d0] sm:$0xff]  ;;  %v795_v41 = vld [vmem:[#allocation10 + $0x158] sm:$0xff]  ;;  %v780_v42 = vld [vmem:[#allocation10 + $0xe0] sm:$0xff] }
  0xc4   : > { %v794_v40 = vld [vmem:[#allocation10 + $0x150] sm:$0xff]  ;;  %v781_v43 = vld [vmem:[#allocation10 + $0xe8] sm:$0xff]  ;;  %v812_v44 = vld [vmem:[#allocation10 + $0x1e0] sm:$0xff] }
  0xc5   : > { %v813_v45 = vld [vmem:[#allocation10 + $0x1e8] sm:$0xff]  ;;  %v796_v52 = vld [vmem:[#allocation10 + $0x160] sm:$0xff]  ;;  %v782_v56 = vld [vmem:[#allocation10 + $0xf0] sm:$0xff] }
  0xc6   : > { %v765_v51 = vld [vmem:[#allocation10 + $0x68] sm:$0xff]  ;;  %v783_v57 = vld [vmem:[#allocation10 + $0xf8] sm:$0xff]  ;;  %v766_v61 = vld [vmem:[#allocation10 + $0x70] sm:$0xff] }
  0xc7   : > { %v1873_v59 = vpack.c.bf16 %v783_v57, %v782_v56  ;;  %v815_v60 = vld [vmem:[#allocation10 + $0x1f8] sm:$0xff]  ;;  %v798_v1 = vld [vmem:[#allocation10 + $0x170] sm:$0xff] }
  0xc8   : > { %v580_v8 = vld [vmem:[%s2828_s30] sm:$0xf] }
  0xc9   : > { %v593_v12 = vrot.slane %v580_v8, %v592_v7  ;;  %v589_v13 = vrot.slane %v580_v8, %v588_v9 }
 0x184   : > { %v554_v34 = vpop.f32.mrb[0].mxu0 }
 0x185   : > { %v555_v35 = vadd.f32 %v1594_v33, %v554_v34  ;;  %v1753_v36 = vpop.f32.mrb[1].mxu0  ;;  %v811_v33 = vld [vmem:[#allocation10 + $0x1d8] sm:$0xff]  ;;  %v1863_v34 = vpack.c.bf16 %v761_v25, %v760_v24 }
 0x186   : > { %v762_v36 = vld [vmem:[#allocation10 + $0x50] sm:$0xff]  ;;  %v1897_v39 = vpack.c.bf16 %v811_v33, %v810_v32 }
 0x187   : > { %v559_v37 = vmin.f32 %v555_v35, 0.0  ;;  %vm558_vm4 = vcmp.gt.f32.partialorder %v555_v35, 0.0 }
 0x189   : > { %v560_v38 = vmul.f32 1.442695, %v559_v37  ;;  %v763_v37 = vld [vmem:[#allocation10 + $0x58] sm:$0xff] }
 0x18a   : > { %v1867_v46 = vpack.c.bf16 %v763_v37, %v762_v36 }
 0x18b   : > { %2138 = vpow2.f32 %v560_v38  ;;  %v1865_v38 = vpack.c.bf16 %v779_v31, %v778_v30 }
 0x195   : > { %v2139_v47 = vpop.eup %2138 }
 0x196   : > { %v1597_v48 = vadd.f32 -1.0, %v2139_v47  ;;  %v1899_v47 = vpack.c.bf16 %v795_v41, %v794_v40 }
 0x198   : > { %v563_v58 = vsel %vm558_vm4, %v555_v35, %v1597_v48  ;;  %v1895_v35 = vpack.c.bf16 %v793_v29, %v792_v28  ;;  %v764_v48 = vld [vmem:[#allocation10 + $0x60] sm:$0xff] }
 0x199   : > { %1598 = vmatmul.mubr.msk.f32.vlgmr.msra.gmra.mrb[0].mxu1 %vm602_vm3, %v563_v58  ;;  %1599 = vmatmul.mubr.msk.f32.vlgmr.msra.gmra.mrb[2].mxu0 %vm602_vm3, %v563_v58  ;;  %v814_v58 = vld [vmem:[#allocation10 + $0x1f0] sm:$0xff] }
 0x19a   : > { %1848 = vmatpush3.bf16.msra.mxu1 %v1847_v49  ;;  %1880 = vmatpush3.bf16.msra.mxu0 %v1879_v50  ;;  %v1869_v49 = vpack.c.bf16 %v781_v43, %v780_v42  ;;  %v1901_v50 = vpack.c.bf16 %v813_v45, %v812_v44 }
 0x19b   : > { %1850 = vmatprep.subr.bf16.mxu1 %v1849_v53  ;;  %1882 = vmatprep.subr.bf16.mxu0 %v1881_v54  ;;  %v797_v53 = vld [vmem:[#allocation10 + $0x168] sm:$0xff]  ;;  %v1871_v54 = vpack.c.bf16 %v765_v51, %v764_v48 }
 0x19c   : > { %v1903_v55 = vpack.c.bf16 %v797_v53, %v796_v52 }
 0x19e   : > { %1852 = vmatpush3.bf16.msra.mxu1 %v1851_v62  ;;  %1884 = vmatpush3.bf16.msra.mxu0 %v1883_v63  ;;  %v767_v62 = vld [vmem:[#allocation10 + $0x78] sm:$0xff]  ;;  %v1905_v63 = vpack.c.bf16 %v815_v60, %v814_v58 }
 0x19f   : > { %1854 = vmatprep.subr.bf16.mxu1 %v1853_v2  ;;  %1886 = vmatprep.subr.bf16.mxu0 %v1885_v3  ;;  %v1875_v0 = vpack.c.bf16 %v767_v62, %v766_v61  ;;  %v799_v2 = vld [vmem:[#allocation10 + $0x178] sm:$0xff] }
 0x1a0   : > { %v1907_v3 = vpack.c.bf16 %v799_v2, %v798_v1 }
 0x1a2   : > { %1856 = vmatpush3.bf16.msra.mxu1 %v1855_v10  ;;  %1888 = vmatpush3.bf16.msra.mxu0 %v1887_v11  ;;  %v596_v10 = vsub.s32 3, %v583_v5  ;;  %v585_v11 = vrot.slane %v580_v8, %v584_v6 }
 0x1a3   : > { %1858 = vmatprep.subr.bf16.mxu1 %v1857_v14  ;;  %1890 = vmatprep.subr.bf16.mxu0 %v1889_v15 }
 0x1a4   : > { %v597_v14 = vrot.slane %v580_v8, %v596_v10 }
 0x1a6   : > { %1860 = vmatpush3.bf16.msra.mxu1 %v1859_v22  ;;  %1892 = vmatpush3.bf16.msra.mxu0 %v1891_v23 }
 0x1a7   : > { %1862 = vmatprep.subr.bf16.mxu1 %v1861_v26  ;;  %1894 = vmatprep.subr.bf16.mxu0 %v1893_v27 }
 0x1aa   : > { %1864 = vmatpush3.bf16.msra.mxu1 %v1863_v34  ;;  %1896 = vmatpush3.bf16.msra.mxu0 %v1895_v35 }
 0x1ab   : > { %1866 = vmatprep.subr.bf16.mxu1 %v1865_v38  ;;  %1898 = vmatprep.subr.bf16.mxu0 %v1897_v39 }
 0x1ae   : > { %1868 = vmatpush3.bf16.msra.mxu1 %v1867_v46  ;;  %1900 = vmatpush3.bf16.msra.mxu0 %v1899_v47 }
 0x1af   : > { %1870 = vmatprep.subr.bf16.mxu1 %v1869_v49  ;;  %1902 = vmatprep.subr.bf16.mxu0 %v1901_v50 }
 0x1b2   : > { %1872 = vmatpush3.bf16.msra.mxu1 %v1871_v54  ;;  %1904 = vmatpush3.bf16.msra.mxu0 %v1903_v55 }
 0x1b3   : > { %1874 = vmatprep.subr.bf16.mxu1 %v1873_v59  ;;  %1906 = vmatprep.subr.bf16.mxu0 %v1905_v63 }
 0x1b6   : > { %1876 = vmatpush3.bf16.msra.mxu1 %v1875_v0  ;;  %1908 = vmatpush3.bf16.msra.mxu0 %v1907_v3 }
 0x26c   : > { %v672_v15 = vpop.f32.mrb[0].mxu1  ;;  %v743_v16 = vpop.f32.mrb[2].mxu0 }
 0x26d   : > { %v673_v17 = vadd.f32 %v672_v15, %v585_v11  ;;  %v744_v18 = vadd.f32 %v743_v16, %v593_v12  ;;  %v674_v19 = vpop.f32.mrb[1].mxu1  ;;  %v745_v20 = vpop.f32.mrb[3].mxu0 }
 0x26e   : > { %v675_v21 = vadd.f32 %v674_v19, %v589_v13  ;;  %v746_v22 = vadd.f32 %v745_v20, %v597_v14 }
 0x26f   : > { %748 = vst [vmem:[#allocation2] sm:$0xff] %v673_v17  ;;  %750 = vst [vmem:[#allocation2 + $0x10] sm:$0xff] %v744_v18 }
 0x270   : > { %749 = vst [vmem:[#allocation2 + $0x8] sm:$0xff] %v675_v21  ;;  %751 = vst [vmem:[#allocation2 + $0x18] sm:$0xff] %v746_v22  ;;  %880 = vmatprep.mubr.f32.mxu1 %v675_v21  ;;  %950 = vmatprep.mubr.f32.mxu0 %v746_v22 }
 0x271   : > { %881 = vmatmul.mubr.f32.vlgmr.msra.gmra.mrb[2].mxu1 %v673_v17  ;;  %951 = vmatmul.mubr.f32.vlgmr.msra.gmra.mrb[4].mxu0 %v744_v18 }
 0x344   : > { %v1640_v23 = vpop.f32.mrb[2].mxu1  ;;  %v1675_v24 = vpop.f32.mrb[4].mxu0 }
 0x345   : > { %v1641_v25 = vpop.f32.mrb[3].mxu1  ;;  %v1676_v26 = vpop.f32.mrb[5].mxu0 }
 0x346   : > { %v1642_v27 = vadd.f32 %v1641_v25, %v1640_v23  ;;  %v1677_v28 = vadd.f32 %v1676_v26, %v1675_v24 }
 0x348   : > { %v953_v29 = vadd.f32 %v1677_v28, %v1642_v27 }
 0x34a   : > { %956 = vst [vmem:[#allocation3] sm:$0xff] %v953_v29 }
 0x34b PF: > { %s2829_s19 = sld [smem:[#allocation20_spill]]  ;;  %v961_v31 = vld [vmem:[%s2673_s6] sm:$0xff]  ;;  %vm964_vm5 = vcmask 64512   ;;  %v1039_v32 = vld [vmem:[#allocation9 + $0x8] sm:$0xff]  ;;  %v2389_v33 = vmov 0.0   ;;  %vm2390_vm6 = vmmov 0  }
 0x34c   : > { %1754 = vmatprep.subr.mxu0 %v2389_v33  ;;  %1756 = vmatprep.mubr.msk.f32.mxu0 %vm2390_vm6, %v2389_v33  ;;  %v1041_v34 = vld [vmem:[#allocation9 + $0x18] sm:$0xff]  ;;  %v1038_v35 = vld [vmem:[#allocation9] sm:$0xff]  ;;  %v1040_v36 = vld [vmem:[#allocation9 + $0x10] sm:$0xff]  ;;  %v2391_v42 = vmov 0.0|0.0   ;;  %s1603_s6 = sshll.u32 %s2366_s16, 7  ;;  %s1442_s5 = sshll.u32 %s2687_s21, 4  ;;  %s2740_s5 = int_to_ptr.vmem [resolvable:$true] %s1442_s5 }
 0x34d   : > { %v1909_v37 = vpack.c.bf16 %v1041_v34, %v1039_v32  ;;  %v1911_v38 = vpack.c.bf16 %v1040_v36, %v1038_v35  ;;  %v1043_v39 = vld [vmem:[#allocation9 + $0x28] sm:$0xff]  ;;  %v1045_v40 = vld [vmem:[#allocation9 + $0x38] sm:$0xff]  ;;  %v1042_v41 = vld [vmem:[#allocation9 + $0x20] sm:$0xff]  ;;  %1973 = vmatprep.subr.bf16.mxu1 %v2391_v42  ;;  %1791 = vmatprep.mubr.msk.f32.mxu1 %vm2390_vm6, %v2389_v33  ;;  %s2830_s11 = sld [smem:[#allocation22_spill]]  ;;  %s1428_s29 = scalar_lea.sflag [#allocation6], %s2669_s7 }
 0x34e   : > { %v1913_v43 = vpack.c.bf16 %v1045_v40, %v1043_v39  ;;  %v1044_v44 = vld [vmem:[#allocation9 + $0x30] sm:$0xff]  ;;  %v1047_v45 = vld [vmem:[#allocation9 + $0x48] sm:$0xff]  ;;  %v1049_v46 = vld [vmem:[#allocation9 + $0x58] sm:$0xff]  ;;  %s2284_s26 = scalar_lea.vmem %s2740_s5, 128  ;;  %p2831_p4 = scmp.ne.s32.totalorder %s2823_s25, 0 }
 0x34f   : > { %v1915_v47 = vpack.c.bf16 %v1044_v44, %v1042_v41  ;;  %v1917_v48 = vpack.c.bf16 %v1049_v46, %v1047_v45  ;;  %v1046_v49 = vld [vmem:[#allocation9 + $0x40] sm:$0xff]  ;;  %v1048_v50 = vld [vmem:[#allocation9 + $0x50] sm:$0xff]  ;;  %v1051_v51 = vld [vmem:[#allocation9 + $0x68] sm:$0xff]  ;;  %p2285_p11 = scmp.ne.s32.totalorder %s2740_s5, %s2284_s26  ;;  %s2392_s16 = smov [#allocation13]  }
 0x350   : > { %v1053_v52 = vld [vmem:[#allocation9 + $0x78] sm:$0xff]  ;;  %v1919_v53 = vpack.c.bf16 %v1048_v50, %v1046_v49  ;;  %v1050_v55 = vld [vmem:[#allocation9 + $0x60] sm:$0xff]  ;;  %v1052_v56 = vld [vmem:[#allocation9 + $0x70] sm:$0xff]  ;;  %s2288_s24 = sshll.u32 %s2392_s16, 4  ;;  %s2289_s24 = int_to_ptr.vmem [resolvable:$false] %s2288_s24 }
 0x351   : > { %v963_v30 = vld [vmem:[%s2829_s19] sm:$0xff]  ;;  %v1921_v54 = vpack.c.bf16 %v1053_v52, %v1051_v51  ;;  %v1055_v57 = vld [vmem:[#allocation9 + $0x88] sm:$0xff]  ;;  %v1142_v59 = vld [vmem:[#allocation12] sm:$0xff]  ;;  %v1923_v63 = vpack.c.bf16 %v1052_v56, %v1050_v55  ;;  %p2286_p6 = pnand %p2285_p11, %p2831_p4  ;;  %s2290_s30 = scalar_lea.vmem %s2289_s24, 256 }
 0x352   : > { %1755 = vmatpush3.msra.mxu0 %v963_v30  ;;  %v1057_v58 = vld [vmem:[#allocation9 + $0x98] sm:$0xff]  ;;  %v1143_v60 = vld [vmem:[#allocation12 + $0x8] sm:$0xff]  ;;  %v1144_v61 = vld [vmem:[#allocation12 + $0x10] sm:$0xff]  ;;  %p2291_p13 = scmp.lt.s32.totalorder %s2740_s5, %s2289_s24  ;;  %p2292_p2 = scmp.lt.s32.totalorder %s2290_s30, %s2284_s26 }
 0x353   : > { %1757 = vmatmul.mubr.msk.f32.vlgmr.msra.gmra.mrb[0].mxu0 %vm964_vm5, %v961_v31  ;;  %1910 = vmatprep.subr.bf16.mxu0 %v1909_v37  ;;  %v1145_v62 = vld [vmem:[#allocation12 + $0x18] sm:$0xff]  ;;  %v1974_v0 = vpack.c.bf16 %v1143_v60, %v1142_v59  ;;  %v1925_v1 = vpack.c.bf16 %v1057_v58, %v1055_v57  ;;  %v1054_v2 = vld [vmem:[#allocation9 + $0x80] sm:$0xff]  ;;  %v1056_v3 = vld [vmem:[#allocation9 + $0x90] sm:$0xff]  ;;  %s2738_s20 = scalar_lea.hbm %s2830_s11, %s1603_s6  ;;  %p2287_p10 = pneg %p2286_p6 }
 0x354   : > { %1134 = vmatprep.mubr.f32.mxu0 %v2389_v33  ;;  %1912 = vmatpush1.bf16.msra.mxu0 %v1911_v38  ;;  %v1059_v4 = vld [vmem:[#allocation9 + $0xa8] sm:$0xff]  ;;  %v1061_v5 = vld [vmem:[#allocation9 + $0xb8] sm:$0xff]  ;;  %v1977_v6 = vpack.c.bf16 %v1145_v62, %v1144_v61  ;;  %v1146_v7 = vld [vmem:[#allocation12 + $0x20] sm:$0xff]  ;;  %v1927_v9 = vpack.c.bf16 %v1056_v3, %v1054_v2  ;;  %p2293_p7 = por %p2292_p2, %p2291_p13 }
 0x355   : > { %1914 = vmatprep.subr.bf16.mxu0 %v1913_v43  ;;  %1975 = vmatpush3.bf16.msra.mxu1 %v1974_v0  ;;  %v1147_v8 = vld [vmem:[#allocation12 + $0x28] sm:$0xff]  ;;  %v1929_v10 = vpack.c.bf16 %v1061_v5, %v1059_v4  ;;  %v1058_v11 = vld [vmem:[#allocation9 + $0xa0] sm:$0xff]  ;;  %v1060_v12 = vld [vmem:[#allocation9 + $0xb0] sm:$0xff] }
 0x356   : > { %1976 = vmatprep.subr.bf16.mxu1 %v2391_v42  ;;  %v1063_v13 = vld [vmem:[#allocation9 + $0xc8] sm:$0xff]  ;;  %v1065_v14 = vld [vmem:[#allocation9 + $0xd8] sm:$0xff]  ;;  %v1980_v15 = vpack.c.bf16 %v1147_v8, %v1146_v7  ;;  %v1148_v16 = vld [vmem:[#allocation12 + $0x30] sm:$0xff]  ;;  %v1931_v18 = vpack.c.bf16 %v1060_v12, %v1058_v11  ;;  %p2294_p3 = pnand %p2293_p7, %p2287_p10 }
 0x357   : > { %v1149_v17 = vld [vmem:[#allocation12 + $0x38] sm:$0xff]  ;;  %v1933_v19 = vpack.c.bf16 %v1065_v14, %v1063_v13  ;;  %v1062_v20 = vld [vmem:[#allocation9 + $0xc0] sm:$0xff]  ;;  %v1064_v21 = vld [vmem:[#allocation9 + $0xd0] sm:$0xff] }
 0x358   : > { %1916 = vmatpush1.bf16.msra.mxu0 %v1915_v47  ;;  %v1067_v22 = vld [vmem:[#allocation9 + $0xe8] sm:$0xff]  ;;  %v1069_v23 = vld [vmem:[#allocation9 + $0xf8] sm:$0xff]  ;;  %v1983_v24 = vpack.c.bf16 %v1149_v17, %v1148_v16  ;;  %v1150_v25 = vld [vmem:[#allocation12 + $0x40] sm:$0xff]  ;;  %v1935_v27 = vpack.c.bf16 %v1064_v21, %v1062_v20 }
 0x359   : > { %1918 = vmatprep.subr.bf16.mxu0 %v1917_v48  ;;  %1978 = vmatpush3.bf16.msra.mxu1 %v1977_v6  ;;  %v1151_v26 = vld [vmem:[#allocation12 + $0x48] sm:$0xff]  ;;  %v1937_v28 = vpack.c.bf16 %v1069_v23, %v1067_v22  ;;  %v1066_v29 = vld [vmem:[#allocation9 + $0xe0] sm:$0xff]  ;;  %v1068_v30 = vld [vmem:[#allocation9 + $0xf0] sm:$0xff] }
 0x35a   : > { %1979 = vmatprep.subr.bf16.mxu1 %v2391_v42  ;;  %v1986_v31 = vpack.c.bf16 %v1151_v26, %v1150_v25  ;;  %v1152_v32 = vld [vmem:[#allocation12 + $0x50] sm:$0xff]  ;;  %v1153_v34 = vld [vmem:[#allocation12 + $0x58] sm:$0xff]  ;;  %v1939_v35 = vpack.c.bf16 %v1068_v30, %v1066_v29  ;;  %v1154_v37 = vld [vmem:[#allocation12 + $0x60] sm:$0xff] }
 0x35b   : > { %v1989_v36 = vpack.c.bf16 %v1153_v34, %v1152_v32  ;;  %v1155_v38 = vld [vmem:[#allocation12 + $0x68] sm:$0xff]  ;;  %v1156_v41 = vld [vmem:[#allocation12 + $0x70] sm:$0xff]  ;;  %v1157_v43 = vld [vmem:[#allocation12 + $0x78] sm:$0xff] }
 0x35c   : > { %1920 = vmatpush1.bf16.msra.mxu0 %v1919_v53  ;;  %v962_v39 = vld [vmem:[#allocation3] sm:$0xff]  ;;  %v1992_v40 = vpack.c.bf16 %v1155_v38, %v1154_v37  ;;  %v1995_v44 = vpack.c.bf16 %v1157_v43, %v1156_v41  ;;  %v1176_v45 = vld [vmem:[#allocation12 + $0x100] sm:$0xff]  ;;  %v1178_v51 = vld [vmem:[#allocation12 + $0x110] sm:$0xff] }
 0x35d   : > { %1922 = vmatprep.subr.bf16.mxu0 %v1921_v54  ;;  %1981 = vmatpush3.bf16.msra.mxu1 %v1980_v15  ;;  %v1177_v46 = vld [vmem:[#allocation12 + $0x108] sm:$0xff]  ;;  %v1160_v48 = vld [vmem:[#allocation12 + $0x80] sm:$0xff]  ;;  %v1179_v52 = vld [vmem:[#allocation12 + $0x118] sm:$0xff] }
 0x35e   : > { %1982 = vmatprep.subr.bf16.mxu1 %v2391_v42  ;;  %v1941_v47 = vpack.c.bf16 %v1177_v46, %v1176_v45  ;;  %v1161_v49 = vld [vmem:[#allocation12 + $0x88] sm:$0xff]  ;;  %v1945_v53 = vpack.c.bf16 %v1179_v52, %v1178_v51  ;;  %v1162_v54 = vld [vmem:[#allocation12 + $0x90] sm:$0xff]  ;;  %v1163_v55 = vld [vmem:[#allocation12 + $0x98] sm:$0xff] }
 0x35f   : > { %v1943_v50 = vpack.c.bf16 %v1161_v49, %v1160_v48  ;;  %v1947_v56 = vpack.c.bf16 %v1163_v55, %v1162_v54  ;;  %v1180_v57 = vld [vmem:[#allocation12 + $0x120] sm:$0xff]  ;;  %v1181_v58 = vld [vmem:[#allocation12 + $0x128] sm:$0xff]  ;;  %v1183_v0 = vld [vmem:[#allocation12 + $0x138] sm:$0xff] }
 0x360   : > { %1924 = vmatpush1.bf16.msra.mxu0 %v1923_v63  ;;  %v1949_v59 = vpack.c.bf16 %v1181_v58, %v1180_v57  ;;  %v1164_v60 = vld [vmem:[#allocation12 + $0xa0] sm:$0xff]  ;;  %v1165_v61 = vld [vmem:[#allocation12 + $0xa8] sm:$0xff]  ;;  %v1182_v63 = vld [vmem:[#allocation12 + $0x130] sm:$0xff] }
 0x361   : > { %1926 = vmatprep.subr.bf16.mxu0 %v1925_v1  ;;  %1984 = vmatpush3.bf16.msra.mxu1 %v1983_v24  ;;  %v1951_v62 = vpack.c.bf16 %v1165_v61, %v1164_v60  ;;  %v1953_v1 = vpack.c.bf16 %v1183_v0, %v1182_v63  ;;  %v1166_v2 = vld [vmem:[#allocation12 + $0xb0] sm:$0xff]  ;;  %v1167_v3 = vld [vmem:[#allocation12 + $0xb8] sm:$0xff]  ;;  %v1184_v5 = vld [vmem:[#allocation12 + $0x140] sm:$0xff] }
 0x362   : > { %1985 = vmatprep.subr.bf16.mxu1 %v2391_v42  ;;  %v1955_v4 = vpack.c.bf16 %v1167_v3, %v1166_v2  ;;  %v1185_v6 = vld [vmem:[#allocation12 + $0x148] sm:$0xff]  ;;  %v1168_v8 = vld [vmem:[#allocation12 + $0xc0] sm:$0xff]  ;;  %v1186_v11 = vld [vmem:[#allocation12 + $0x150] sm:$0xff] }
 0x363   : > { %v1957_v7 = vpack.c.bf16 %v1185_v6, %v1184_v5  ;;  %v1187_v12 = vld [vmem:[#allocation12 + $0x158] sm:$0xff]  ;;  %v1170_v14 = vld [vmem:[#allocation12 + $0xd0] sm:$0xff]  ;;  %v1188_v17 = vld [vmem:[#allocation12 + $0x160] sm:$0xff] }
 0x364   : > { %1928 = vmatpush1.bf16.msra.mxu0 %v1927_v9  ;;  %v1169_v9 = vld [vmem:[#allocation12 + $0xc8] sm:$0xff]  ;;  %v1961_v13 = vpack.c.bf16 %v1187_v12, %v1186_v11  ;;  %v1171_v15 = vld [vmem:[#allocation12 + $0xd8] sm:$0xff]  ;;  %v1172_v20 = vld [vmem:[#allocation12 + $0xe0] sm:$0xff] }
 0x365   : > { %1930 = vmatprep.subr.bf16.mxu0 %v1929_v10  ;;  %1987 = vmatpush3.bf16.msra.mxu1 %v1986_v31  ;;  %v1959_v10 = vpack.c.bf16 %v1169_v9, %v1168_v8  ;;  %v1963_v16 = vpack.c.bf16 %v1171_v15, %v1170_v14  ;;  %v1173_v21 = vld [vmem:[#allocation12 + $0xe8] sm:$0xff]  ;;  %v1190_v23 = vld [vmem:[#allocation12 + $0x170] sm:$0xff]  ;;  %v1191_v24 = vld [vmem:[#allocation12 + $0x178] sm:$0xff] }
 0x366   : > { %1988 = vmatprep.subr.bf16.mxu1 %v2391_v42  ;;  %v1967_v22 = vpack.c.bf16 %v1173_v21, %v1172_v20  ;;  %v1969_v25 = vpack.c.bf16 %v1191_v24, %v1190_v23  ;;  %v1174_v26 = vld [vmem:[#allocation12 + $0xf0] sm:$0xff]  ;;  %v1332_v29 = vld [vmem:[#allocation12 + $0x180] sm:$0xff]  ;;  %v1333_v30 = vld [vmem:[#allocation12 + $0x188] sm:$0xff] }
 0x367   : > { %v957_v31 = vld [vmem:[#allocation2] sm:$0xff]  ;;  %v1998_v34 = vpack.c.bf16 %v1333_v30, %v1332_v29  ;;  %v1334_v37 = vld [vmem:[#allocation12 + $0x190] sm:$0xff]  ;;  %v1335_v38 = vld [vmem:[#allocation12 + $0x198] sm:$0xff] }
 0x368   : > { %1932 = vmatpush1.bf16.msra.mxu0 %v1931_v18  ;;  %v1189_v18 = vld [vmem:[#allocation12 + $0x168] sm:$0xff]  ;;  %v1339_v45 = vld [vmem:[#allocation12 + $0x1b8] sm:$0xff]  ;;  %v1344_v52 = vld [vmem:[#allocation12 + $0x1e0] sm:$0xff] }
 0x369   : > { %1934 = vmatprep.subr.bf16.mxu0 %v1933_v19  ;;  %1990 = vmatpush3.bf16.msra.mxu1 %v1989_v36  ;;  %v1965_v19 = vpack.c.bf16 %v1189_v18, %v1188_v17  ;;  %v1337_v41 = vld [vmem:[#allocation12 + $0x1a8] sm:$0xff]  ;;  %v1346_v55 = vld [vmem:[#allocation12 + $0x1f0] sm:$0xff]  ;;  %v959_v58 = vld [vmem:[#allocation2 + $0x10] sm:$0xff] }
 0x36a   : > { %1991 = vmatprep.subr.bf16.mxu1 %v2391_v42  ;;  %v1341_v48 = vld [vmem:[#allocation12 + $0x1c8] sm:$0xff]  ;;  %v958_v60 = vld [vmem:[#allocation2 + $0x8] sm:$0xff] }
 0x36c   : > { %1936 = vmatpush1.bf16.msra.mxu0 %v1935_v27  ;;  %v1175_v27 = vld [vmem:[#allocation12 + $0xf8] sm:$0xff] }
 0x36d   : > { %1938 = vmatprep.subr.bf16.mxu0 %v1937_v28  ;;  %1993 = vmatpush3.bf16.msra.mxu1 %v1992_v40  ;;  %v1971_v28 = vpack.c.bf16 %v1175_v27, %v1174_v26  ;;  %v1336_v40 = vld [vmem:[#allocation12 + $0x1a0] sm:$0xff] }
 0x36e   : > { %1994 = vmatprep.subr.bf16.mxu1 %v2391_v42  ;;  %v2004_v43 = vpack.c.bf16 %v1337_v41, %v1336_v40 }
 0x370   : > { %1940 = vmatpush1.bf16.msra.mxu0 %v1939_v35 }
 0x371   : > { %1996 = vmatpush3.bf16.msra.mxu1 %v1995_v44  ;;  %1942 = vmatprep.subr.bf16.mxu0 %v1941_v47  ;;  %v1338_v44 = vld [vmem:[#allocation12 + $0x1b0] sm:$0xff]  ;;  %v1340_v47 = vld [vmem:[#allocation12 + $0x1c0] sm:$0xff] }
 0x372   : > { %1997 = vmatprep.subr.bf16.mxu1 %v2391_v42  ;;  %v2007_v46 = vpack.c.bf16 %v1339_v45, %v1338_v44  ;;  %v2010_v49 = vpack.c.bf16 %v1341_v48, %v1340_v47 }
 0x373   : > { %1135 = vmatmul.mubr.f32.vlgmr.msra.gmra.mrb[2].mxu0 %v962_v39  ;;  %v2001_v39 = vpack.c.bf16 %v1335_v38, %v1334_v37 }
 0x374   : > { %1944 = vmatpush3.bf16.msra.mxu0 %v1943_v50  ;;  %v1343_v50 = vld [vmem:[#allocation12 + $0x1d8] sm:$0xff] }
 0x375   : > { %1946 = vmatprep.subr.bf16.mxu0 %v1945_v53  ;;  %v1345_v53 = vld [vmem:[#allocation12 + $0x1e8] sm:$0xff] }
 0x376   : > { %v2016_v54 = vpack.c.bf16 %v1345_v53, %v1344_v52 }
 0x378   : > { %1948 = vmatpush3.bf16.msra.mxu0 %v1947_v56  ;;  %v1347_v56 = vld [vmem:[#allocation12 + $0x1f8] sm:$0xff] }
 0x379   : > { %1950 = vmatprep.subr.bf16.mxu0 %v1949_v59  ;;  %v2019_v57 = vpack.c.bf16 %v1347_v56, %v1346_v55  ;;  %v960_v59 = vld [vmem:[#allocation2 + $0x18] sm:$0xff] }
 0x37c   : > { %1952 = vmatpush3.bf16.msra.mxu0 %v1951_v62 }
 0x37d   : > { %1954 = vmatprep.subr.bf16.mxu0 %v1953_v1 }
 0x380   : > { %1956 = vmatpush3.bf16.msra.mxu0 %v1955_v4 }
 0x381   : > { %1958 = vmatprep.subr.bf16.mxu0 %v1957_v7 }
 0x384   : > { %1960 = vmatpush3.bf16.msra.mxu0 %v1959_v10 }
 0x385   : > { %1962 = vmatprep.subr.bf16.mxu0 %v1961_v13 }
 0x388   : > { %1964 = vmatpush3.bf16.msra.mxu0 %v1963_v16 }
 0x389   : > { %1966 = vmatprep.subr.bf16.mxu0 %v1965_v19 }
 0x38c   : > { %1968 = vmatpush3.bf16.msra.mxu0 %v1967_v22 }
 0x38d   : > { %1970 = vmatprep.subr.bf16.mxu0 %v1969_v25 }
 0x390   : > { %1972 = vmatpush3.bf16.msra.mxu0 %v1971_v28 }
 0x426   : > { %v1034_v32 = vpop.f32.mrb[0].mxu0 }
 0x427   : > { %v1141_v35 = vmul.f32 %v1034_v32, %v957_v31  ;;  %v1758_v36 = vpop.f32.mrb[1].mxu0 }
 0x429   : > { %1792 = vmatmul.mubr.f32.vlgmr.msra.gmra.mrb[0].mxu1 %v1141_v35 }
 0x42a   : > { %1999 = vmatpush3.bf16.msra.mxu1 %v1998_v34  ;;  %1826 = vmatprep.mubr.msk.f32.mxu1 %vm2390_vm6, %v2389_v33  ;;  %v1342_v33 = vld [vmem:[#allocation12 + $0x1d0] sm:$0xff] }
 0x42b   : > { %2000 = vmatprep.subr.bf16.mxu1 %v2391_v42  ;;  %v2013_v51 = vpack.c.bf16 %v1343_v50, %v1342_v33 }
 0x42e   : > { %2002 = vmatpush3.bf16.msra.mxu1 %v2001_v39 }
 0x42f   : > { %2003 = vmatprep.subr.bf16.mxu1 %v2391_v42 }
 0x432   : > { %2005 = vmatpush3.bf16.msra.mxu1 %v2004_v43 }
 0x433   : > { %2006 = vmatprep.subr.bf16.mxu1 %v2391_v42 }
 0x436   : > { %2008 = vmatpush3.bf16.msra.mxu1 %v2007_v46 }
 0x437   : > { %2009 = vmatprep.subr.bf16.mxu1 %v2391_v42 }
 0x43a   : > { %2011 = vmatpush3.bf16.msra.mxu1 %v2010_v49 }
 0x43b   : > { %2012 = vmatprep.subr.bf16.mxu1 %v2391_v42 }
 0x43e   : > { %2014 = vmatpush3.bf16.msra.mxu1 %v2013_v51 }
 0x43f   : > { %2015 = vmatprep.subr.bf16.mxu1 %v2391_v42 }
 0x442   : > { %2017 = vmatpush3.bf16.msra.mxu1 %v2016_v54 }
 0x443   : > { %2018 = vmatprep.subr.bf16.mxu1 %v2391_v42 }
 0x446   : > { %2020 = vmatpush3.bf16.msra.mxu1 %v2019_v57  ;;  %v1136_v61 = vpop.f32.mrb[2].mxu0 }
 0x447   : > { %v1138_v62 = vpop.f32.mrb[3].mxu0  ;;  %v1158_v0 = vmul.f32 %v1136_v61, %v958_v60 }
 0x448   : > { %v1159_v63 = vmul.f32 %v1138_v62, %v959_v58 }
 0x449   : > { %1827 = vmatmul.mubr.f32.vlgmr.msra.gmra.mrb[0].mxu1 %v960_v59 }
 0x44a   : > { %1256 = vmatprep.mubr.f32.mxu0 %v1159_v63 }
 0x44b   : > { %1257 = vmatmul.mubr.f32.vlgmr.msra.gmra.mrb[4].mxu0 %v1158_v0 }
 0x51c   : > { %v1414_v1 = vpop.f32.mrb[0].mxu1 }
 0x51d   : > { %v1828_v2 = vpop.f32.mrb[1].mxu1 }
 0x51e   : > { %v1712_v3 = vpop.f32.mrb[4].mxu0 }
 0x51f   : > { %v1713_v4 = vpop.f32.mrb[5].mxu0 }
 0x520   : > { %v1714_v42 = vadd.f32 %v1713_v4, %v1712_v3 }
 0x522   : > { %v2021_v5 = vadd.f32 %v1714_v42, %v1414_v1 }
 0x524   : > { %v1420_v6 = vmin.f32 %v2021_v5, 0.0  ;;  %vm1419_vm7 = vcmp.gt.f32.partialorder %v2021_v5, 0.0 }
 0x526   : > { %v1421_v7 = vmul.f32 1.442695, %v1420_v6 }
 0x528   : > { %2140 = vpow2.f32 %v1421_v7 }
 0x532   : > { %v2141_v8 = vpop.eup %2140 }
 0x533   : > { %v1601_v9 = vadd.f32 -1.0, %v2141_v8 }
 0x535   : > { %v1424_v10 = vsel %vm1419_vm7, %v2021_v5, %v1601_v9 }
 0x536   : > { %1425 = vst [vmem:[#allocation3] sm:$0xff] %v1424_v10  ;;  %1426 = vst [vmem:[%s2687_s21] sm:$0xff] %v1424_v10 }
 0x537   : > { %2297 = shalt.err (!%p2294_p3)
}
 0x538   : > { %s2298_s7 = scalar_lea.hbm %s2738_s20, 128  ;;  %s2302_s28 = scalar_lea.hbm %s2830_s11, 384 }
 0x539   : > { %p2299_p1 = scmp.ne.s32.totalorder %s2738_s20, %s2298_s7  ;;  %p2303_p8 = scmp.lt.u32.totalorder %s2738_s20, %s2830_s11 }
 0x53a   : > { %p2304_p12 = scmp.lt.u32.totalorder %s2302_s28, %s2298_s7  ;;  %p2306_p11 = scmp.lt.u32.totalorder %s2298_s7, %s2738_s20 }
 0x53b   : > { %p2300_p5 = pnand %p2299_p1, %p2831_p4 }
 0x53c   : > { %p2305_p0 = por %p2304_p12, %p2303_p8 }
 0x53d   : > { %p2301_p9 = pneg %p2300_p5 }
 0x53e   : > { %p2307_p6 = por %p2306_p11, %p2305_p0 }
 0x540   : > { %p2308_p10 = pnand %p2307_p6, %p2301_p9 }
 0x542   : > { %2311 = shalt.err (!%p2308_p10)
}
 0x543   : > { %2042 = dma.vmem_to_hbm [thread:$0]  (%p2831_p4), %s2740_s5, 128, %s2738_s20, %s1428_s29  }
 0x544 PF: > { %p2074_p13 = scmp.ge.s32.totalorder %s2374_s18, 2  ;;  %s1454_s22 = sand.u32 1, %s2354_s13  }
 0x545   : > { %p2832_p2 = scmp.ne.s32.totalorder %s2824_s23, 0  ;;  %s1455_s4 = scalar_lea.sflag [#allocation6], %s1454_s22 }
 0x547   : > { %p2062_p7 = pnand %p2074_p13, %p2832_p2 }
 0x549   : > { %2349 = dma.done.wait (!%p2062_p7), %s1455_s4, 128  }
 0x54a   : > { %2351 = vsyncadd (!%p2062_p7), %s1455_s4, 4294967168  ;;  %s28_s18 = sadd.s32 1, %s2374_s18   ;;  %s2833_s13 = smov %s2358_s14 }
 0x54b   : > { %p25_p3 = scmp.ge.s32.totalorder %s28_s18, 5   ;;  %s2834_s14 = smov %s2362_s15 }
 0x54c   : > { %s2835_s15 = smov %s2619_s27  ;;  %s2836_s16 = smov %s2370_s17 }
 0x54d   : > { %s2837_s17 = smov %s2839_s12  ;;  %27 = sbr.rel (!%p25_p3) target bundleno = 14 (0xe), region = 128 }
 0x554   :  { %1460 = vsyncpa [#allocation5], 1 }
 0x555   :  { %1462 = vsyncpa [#allocation5 + $0x1], 1 }
 0x556   :  { %1463 = vsyncpa [#allocation8], 1 }
 0x557   :  { %1464 = vsyncpa [#allocation11], 1 }
 0x558   :  { %1465 = vsyncpa [#allocation6], 1 }
 0x559   :  { %1467 = vsyncpa [#allocation6 + $0x1], 1 }

</bundles_post_ra>
